<compile_context>
chip_gen: v7x
topology: tpu7x:2x2x1
jax: 0.10.0
libtpu: 0.0.40
codegen_flags: <defaults>
</compile_context>

<pallas_src>
import functools

import jax
import jax.numpy as jnp
from jax.experimental import pallas as pl
from jax.experimental.pallas import tpu as pltpu


# ---------------------------------------------------------------------------
# Pallas kernel: fused encoder stack + classifier head
# ---------------------------------------------------------------------------
def _layernorm(x, gamma, beta, eps=1e-5):
    mu = jnp.mean(x, axis=-1, keepdims=True)
    var = jnp.mean((x - mu) ** 2, axis=-1, keepdims=True)
    return (x - mu) * jax.lax.rsqrt(var + eps) * gamma + beta


def fused_encoder_classifier_kernel(
        x_ref,                            # [1, S, D] f32  input embeddings (one batch elem)
        wq_ref, wk_ref, wv_ref, wo_ref,   # [1, D, D] bf16 (current layer)
        w1_ref, w2_ref,                   # [1, D, F], [1, F, D] bf16
        sd_ref,                           # [1, 9, D] f32 packed: bq,bk,bv,bo,ln1g,ln1b,b2,ln2g,ln2b
        b1_ref,                           # [1, 1, F] f32
        clsw_ref,                         # [D, C] bf16
        clsb_ref,                         # [1, C] f32
        logits_ref,                       # out: [1, 1, C] f32
        x_scr,                            # VMEM scratch [S, D] f32 (activation, resident over L)
        *, num_heads):
    l = pl.program_id(1)
    num_l = pl.num_programs(1)

    # Load the embedding into the resident activation scratch on the first layer.
    @pl.when(l == 0)
    def _():
        x_scr[...] = x_ref[0]

    x = x_scr[...]                                    # [S, D] f32
    S, D = x.shape
    H = num_heads
    hd = D // H
    scale = 1.0 / float(hd) ** 0.5

    sd = sd_ref[0]                                    # [9, D] f32
    bq, bk, bv, bo = sd[0:1, :], sd[1:2, :], sd[2:3, :], sd[3:4, :]
    ln1g, ln1b = sd[4:5, :], sd[5:6, :]
    b2 = sd[6:7, :]
    ln2g, ln2b = sd[7:8, :], sd[8:9, :]
    b1 = b1_ref[0]                                    # [1, F] f32

    xb = x.astype(jnp.bfloat16)

    # ---- Q/K/V projections (bf16 MXU, f32 accumulate) ---------------------
    q = jnp.dot(xb, wq_ref[0], preferred_element_type=jnp.float32) + bq
    k = jnp.dot(xb, wk_ref[0], preferred_element_type=jnp.float32) + bk
    v = jnp.dot(xb, wv_ref[0], preferred_element_type=jnp.float32) + bv

    # ---- head-batched self-attention (no per-head loop, no concat) --------
    qh = jnp.swapaxes(q.reshape(S, H, hd), 0, 1).astype(jnp.bfloat16)   # [H,S,hd]
    kh = jnp.swapaxes(k.reshape(S, H, hd), 0, 1).astype(jnp.bfloat16)
    vh = jnp.swapaxes(v.reshape(S, H, hd), 0, 1).astype(jnp.bfloat16)

    s = jnp.einsum('hqd,hkd->hqk', qh, kh,
                   preferred_element_type=jnp.float32) * scale          # [H,S,S] f32
    s = s - jnp.max(s, axis=-1, keepdims=True)
    p = jnp.exp(s)
    p = p * pl.reciprocal(jnp.sum(p, axis=-1, keepdims=True), approx=True)
    o = jnp.einsum('hqk,hkd->hqd', p.astype(jnp.bfloat16), vh,
                   preferred_element_type=jnp.float32)                  # [H,S,hd]
    attn = jnp.swapaxes(o, 0, 1).reshape(S, D)                          # [S,D] f32

    attn = jnp.dot(attn.astype(jnp.bfloat16), wo_ref[0],
                   preferred_element_type=jnp.float32) + bo
    x1 = _layernorm(x + attn, ln1g, ln1b)                               # post-norm

    # ---- feed-forward ------------------------------------------------------
    h1 = jnp.dot(x1.astype(jnp.bfloat16), w1_ref[0],
                 preferred_element_type=jnp.float32) + b1
    h1 = jnp.maximum(h1, 0.0)                                           # ReLU
    h2 = jnp.dot(h1.astype(jnp.bfloat16), w2_ref[0],
                 preferred_element_type=jnp.float32) + b2
    x2 = _layernorm(x1 + h2, ln2g, ln2b)

    x_scr[...] = x2                                   # carry to next layer

    # ---- classifier epilogue (mean-pool + linear) on the last layer -------
    @pl.when(l == num_l - 1)
    def _():
        pooled = jnp.mean(x2, axis=0, keepdims=True)                    # [1, D]
        logits = jnp.dot(pooled.astype(jnp.bfloat16), clsw_ref[...],
                         preferred_element_type=jnp.float32) + clsb_ref[...]
        logits_ref[0] = logits.astype(logits_ref.dtype)


# ---------------------------------------------------------------------------
# Wrapper
# ---------------------------------------------------------------------------
def model_forward(token_ids, embed_table, stacked, cls_w, cls_b, *, num_heads):
    # "ESM" representation: deterministic embedding lookup (glue, plain JAX).
    x = jnp.take(embed_table, token_ids, axis=0).astype(jnp.float32)    # [B,S,D]
    B, S, D = x.shape
    L = stacked["wq"].shape[0]
    F = stacked["w1"].shape[-1]
    C = cls_w.shape[-1]

    def per_layer(shp):
        return pl.BlockSpec(shp, lambda b, l: (l,) + (0,) * (len(shp) - 1))

    def shared(shp):
        return pl.BlockSpec(shp, lambda b, l: (0,) * len(shp))

    kern = functools.partial(fused_encoder_classifier_kernel,
                             num_heads=num_heads)
    out = pl.pallas_call(
        kern,
        out_shape=jax.ShapeDtypeStruct((B, 1, C), jnp.float32),
        grid=(B, L),
        in_specs=[
            pl.BlockSpec((1, S, D), lambda b, l: (b, 0, 0)),   # x (resident over L)
            per_layer((1, D, D)),   # wq
            per_layer((1, D, D)),   # wk
            per_layer((1, D, D)),   # wv
            per_layer((1, D, D)),   # wo
            per_layer((1, D, F)),   # w1
            per_layer((1, F, D)),   # w2
            per_layer((1, 9, D)),   # packed biases / LN params
            per_layer((1, 1, F)),   # b1
            shared((D, C)),         # classifier weight
            shared((1, C)),         # classifier bias
        ],
        out_specs=pl.BlockSpec((1, 1, C), lambda b, l: (b, 0, 0)),
        scratch_shapes=[pltpu.VMEM((S, D), jnp.float32)],
        compiler_params=pltpu.CompilerParams(
            dimension_semantics=("parallel", "arbitrary"),
            vmem_limit_bytes=48 * 1024 * 1024),
    )(x,
      stacked["wq"], stacked["wk"], stacked["wv"], stacked["wo"],
      stacked["w1"], stacked["w2"], stacked["small_d"], stacked["b1"],
      cls_w, cls_b)
    return out[:, 0, :]                                                  # [B, C]


# ---------------------------------------------------------------------------
# Deterministic parameter init (weights stacked on a leading layer axis)
# ---------------------------------------------------------------------------
def init_params(key, num_layers, model_dim, ff_dim, vocab_size, num_classes):
    D, F, L = model_dim, ff_dim, num_layers
    keys = jax.random.split(key, 8)
    s = 0.02
    embed_table = jax.random.normal(keys[0], (vocab_size, D), jnp.float32) * s

    def w(k, shape):
        return (jax.random.normal(k, shape, jnp.float32) * s).astype(jnp.bfloat16)

    stacked = dict(
        wq=w(keys[1], (L, D, D)),
        wk=w(keys[2], (L, D, D)),
        wv=w(keys[3], (L, D, D)),
        wo=w(keys[4], (L, D, D)),
        w1=w(keys[5], (L, D, F)),
        w2=w(keys[6], (L, F, D)),
    )
    # Packed per-layer small params: rows = bq, bk, bv, bo, ln1g, ln1b, b2, ln2g, ln2b
    small = jnp.zeros((L, 9, D), jnp.float32)
    small = small.at[:, 4, :].set(1.0)   # ln1 gamma
    small = small.at[:, 7, :].set(1.0)   # ln2 gamma
    stacked["small_d"] = small
    stacked["b1"] = jnp.zeros((L, 1, F), jnp.float32)

    cls_w = (jax.random.normal(keys[7], (D, num_classes), jnp.float32) * s
             ).astype(jnp.bfloat16)
    cls_b = jnp.zeros((1, num_classes), jnp.float32)
    return embed_table, stacked, cls_w, cls_b


# ---------------------------------------------------------------------------
if __name__ == "__main__":
    B, S = 2, 8
    num_layers, model_dim, num_heads, ff_dim = 2, 32, 4, 64
    vocab_size, num_classes = 33, 2   # ESM alphabet ~33 tokens

    key = jax.random.PRNGKey(0)
    k_tok, k_par = jax.random.split(key)

    token_ids = jax.random.randint(k_tok, (B, S), 0, vocab_size)
    embed_table, stacked, cls_w, cls_b = init_params(
        k_par, num_layers, model_dim, ff_dim, vocab_size, num_classes)

    logits = model_forward(token_ids, embed_table, stacked, cls_w, cls_b,
                           num_heads=num_heads)
    jax.block_until_ready(logits)
    assert logits.shape == (B, num_classes)
    print("KERNEL_OK")
</pallas_src>

<mosaic_0001>
module attributes {stable_mosaic.version = 11 : i64} {
  func.func @fused_encoder_classifier_kernel(%arg0: i32, %arg1: i32, %arg2: memref<1x8x32xf32, #tpu.memory_space<vmem>>, %arg3: memref<1x32x32xbf16, #tpu.memory_space<vmem>>, %arg4: memref<1x32x32xbf16, #tpu.memory_space<vmem>>, %arg5: memref<1x32x32xbf16, #tpu.memory_space<vmem>>, %arg6: memref<1x32x32xbf16, #tpu.memory_space<vmem>>, %arg7: memref<1x32x64xbf16, #tpu.memory_space<vmem>>, %arg8: memref<1x64x32xbf16, #tpu.memory_space<vmem>>, %arg9: memref<1x9x32xf32, #tpu.memory_space<vmem>>, %arg10: memref<1x1x64xf32, #tpu.memory_space<vmem>>, %arg11: memref<32x2xbf16, #tpu.memory_space<vmem>>, %arg12: memref<1x2xf32, #tpu.memory_space<vmem>>, %arg13: memref<1x1x2xf32, #tpu.memory_space<vmem>>, %arg14: memref<8x32xf32, #tpu.memory_space<vmem>>) attributes {dimension_semantics = [#tpu.dimension_semantics<parallel>, #tpu.dimension_semantics<arbitrary>], iteration_bounds = array<i64: 2, 2>, scalar_prefetch = 0 : i64, scratch_operands = 1 : i64, tpu.core_type = #tpu.core_type<tc>, window_params = [{transform_indices = @transform_0, window_bounds = array<i64: 1, 8, 32>}, {transform_indices = @transform_1, window_bounds = array<i64: 1, 32, 32>}, {transform_indices = @transform_2, window_bounds = array<i64: 1, 32, 32>}, {transform_indices = @transform_3, window_bounds = array<i64: 1, 32, 32>}, {transform_indices = @transform_4, window_bounds = array<i64: 1, 32, 32>}, {transform_indices = @transform_5, window_bounds = array<i64: 1, 32, 64>}, {transform_indices = @transform_6, window_bounds = array<i64: 1, 64, 32>}, {transform_indices = @transform_7, window_bounds = array<i64: 1, 9, 32>}, {transform_indices = @transform_8, window_bounds = array<i64: 1, 1, 64>}, {pipeline_mode = #tpu.pipeline_mode<synchronous>, transform_indices = @transform_9, window_bounds = array<i64: 32, 2>}, {pipeline_mode = #tpu.pipeline_mode<synchronous>, transform_indices = @transform_10, window_bounds = array<i64: 1, 2>}, {transform_indices = @transform_11, window_bounds = array<i64: 1, 1, 2>}]} {
    %c0_i32 = arith.constant 0 : i32
    %0 = arith.cmpi eq, %arg1, %c0_i32 : i32
    %1 = arith.extui %0 : i1 to i32
    %c0_i32_0 = arith.constant 0 : i32
    %2 = arith.cmpi ne, %1, %c0_i32_0 : i32
    scf.if %2 {
      %c0_50 = arith.constant 0 : index
      %c0_51 = arith.constant 0 : index
      %c0_52 = arith.constant 0 : index
      %129 = vector.load %arg2[%c0_50, %c0_51, %c0_52] : memref<1x8x32xf32, #tpu.memory_space<vmem>>, vector<1x8x32xf32>
      %130 = vector.shape_cast %129 : vector<1x8x32xf32> to vector<8x32xf32>
      %c0_53 = arith.constant 0 : index
      %c0_54 = arith.constant 0 : index
      %131 = vector.load %arg14[%c0_53, %c0_54] : memref<8x32xf32, #tpu.memory_space<vmem>>, vector<8x32xf32>
      tpu.vector_store %arg14[%c0_53, %c0_54], %130 {strides = array<i32>} : memref<8x32xf32, #tpu.memory_space<vmem>>, vector<8x32xf32>,
    } else {
    }
    %c0 = arith.constant 0 : index
    %c0_1 = arith.constant 0 : index
    %3 = vector.load %arg14[%c0, %c0_1] : memref<8x32xf32, #tpu.memory_space<vmem>>, vector<8x32xf32>
    %c0_2 = arith.constant 0 : index
    %c0_3 = arith.constant 0 : index
    %c0_4 = arith.constant 0 : index
    %4 = vector.load %arg9[%c0_2, %c0_3, %c0_4] : memref<1x9x32xf32, #tpu.memory_space<vmem>>, vector<1x9x32xf32>
    %5 = vector.shape_cast %4 : vector<1x9x32xf32> to vector<9x32xf32>
    %6 = vector.extract_strided_slice %5 {offsets = [0, 0], sizes = [1, 32], strides = [1, 1]} : vector<9x32xf32> to vector<1x32xf32>
    %7 = vector.extract_strided_slice %5 {offsets = [1, 0], sizes = [1, 32], strides = [1, 1]} : vector<9x32xf32> to vector<1x32xf32>
    %8 = vector.extract_strided_slice %5 {offsets = [2, 0], sizes = [1, 32], strides = [1, 1]} : vector<9x32xf32> to vector<1x32xf32>
    %9 = vector.extract_strided_slice %5 {offsets = [3, 0], sizes = [1, 32], strides = [1, 1]} : vector<9x32xf32> to vector<1x32xf32>
    %10 = vector.extract_strided_slice %5 {offsets = [4, 0], sizes = [1, 32], strides = [1, 1]} : vector<9x32xf32> to vector<1x32xf32>
    %11 = vector.extract_strided_slice %5 {offsets = [5, 0], sizes = [1, 32], strides = [1, 1]} : vector<9x32xf32> to vector<1x32xf32>
    %12 = vector.extract_strided_slice %5 {offsets = [6, 0], sizes = [1, 32], strides = [1, 1]} : vector<9x32xf32> to vector<1x32xf32>
    %13 = vector.extract_strided_slice %5 {offsets = [7, 0], sizes = [1, 32], strides = [1, 1]} : vector<9x32xf32> to vector<1x32xf32>
    %14 = vector.extract_strided_slice %5 {offsets = [8, 0], sizes = [1, 32], strides = [1, 1]} : vector<9x32xf32> to vector<1x32xf32>
    %c0_5 = arith.constant 0 : index
    %c0_6 = arith.constant 0 : index
    %c0_7 = arith.constant 0 : index
    %15 = vector.load %arg10[%c0_5, %c0_6, %c0_7] : memref<1x1x64xf32, #tpu.memory_space<vmem>>, vector<1x1x64xf32>
    %16 = vector.shape_cast %15 : vector<1x1x64xf32> to vector<1x64xf32>
    %17 = arith.truncf %3 : vector<8x32xf32> to vector<8x32xbf16>
    %c0_8 = arith.constant 0 : index
    %c0_9 = arith.constant 0 : index
    %c0_10 = arith.constant 0 : index
    %18 = vector.load %arg3[%c0_8, %c0_9, %c0_10] : memref<1x32x32xbf16, #tpu.memory_space<vmem>>, vector<1x32x32xbf16>
    %19 = vector.shape_cast %18 : vector<1x32x32xbf16> to vector<32x32xbf16>
    %cst = arith.constant dense<0.000000e+00> : vector<8x32xf32>
    %20 = tpu.matmul %17, %19, %cst {dimension_numbers = #tpu.dot_dimension_numbers<[1], [0], [0], [1], [0, 0, 1, 1], [], []>} : vector<8x32xbf16>, vector<32x32xbf16>, vector<8x32xf32> -> vector<8x32xf32>
    %21 = vector.broadcast %6 : vector<1x32xf32> to vector<8x32xf32>
    %22 = arith.addf %20, %21 : vector<8x32xf32>
    %c0_11 = arith.constant 0 : index
    %c0_12 = arith.constant 0 : index
    %c0_13 = arith.constant 0 : index
    %23 = vector.load %arg4[%c0_11, %c0_12, %c0_13] : memref<1x32x32xbf16, #tpu.memory_space<vmem>>, vector<1x32x32xbf16>
    %24 = vector.shape_cast %23 : vector<1x32x32xbf16> to vector<32x32xbf16>
    %cst_14 = arith.constant dense<0.000000e+00> : vector<8x32xf32>
    %25 = tpu.matmul %17, %24, %cst_14 {dimension_numbers = #tpu.dot_dimension_numbers<[1], [0], [0], [1], [0, 0, 1, 1], [], []>} : vector<8x32xbf16>, vector<32x32xbf16>, vector<8x32xf32> -> vector<8x32xf32>
    %26 = vector.broadcast %7 : vector<1x32xf32> to vector<8x32xf32>
    %27 = arith.addf %25, %26 : vector<8x32xf32>
    %c0_15 = arith.constant 0 : index
    %c0_16 = arith.constant 0 : index
    %c0_17 = arith.constant 0 : index
    %28 = vector.load %arg5[%c0_15, %c0_16, %c0_17] : memref<1x32x32xbf16, #tpu.memory_space<vmem>>, vector<1x32x32xbf16>
    %29 = vector.shape_cast %28 : vector<1x32x32xbf16> to vector<32x32xbf16>
    %cst_18 = arith.constant dense<0.000000e+00> : vector<8x32xf32>
    %30 = tpu.matmul %17, %29, %cst_18 {dimension_numbers = #tpu.dot_dimension_numbers<[1], [0], [0], [1], [0, 0, 1, 1], [], []>} : vector<8x32xbf16>, vector<32x32xbf16>, vector<8x32xf32> -> vector<8x32xf32>
    %31 = vector.broadcast %8 : vector<1x32xf32> to vector<8x32xf32>
    %32 = arith.addf %30, %31 : vector<8x32xf32>
    %33 = vector.shape_cast %22 : vector<8x32xf32> to vector<8x4x8xf32>
    %34 = tpu.transpose %33, [1, 0, 2] : vector<8x4x8xf32> -> vector<4x8x8xf32>
    %35 = arith.truncf %34 : vector<4x8x8xf32> to vector<4x8x8xbf16>
    %36 = vector.shape_cast %27 : vector<8x32xf32> to vector<8x4x8xf32>
    %37 = tpu.transpose %36, [1, 0, 2] : vector<8x4x8xf32> -> vector<4x8x8xf32>
    %38 = arith.truncf %37 : vector<4x8x8xf32> to vector<4x8x8xbf16>
    %39 = vector.shape_cast %32 : vector<8x32xf32> to vector<8x4x8xf32>
    %40 = tpu.transpose %39, [1, 0, 2] : vector<8x4x8xf32> -> vector<4x8x8xf32>
    %41 = arith.truncf %40 : vector<4x8x8xf32> to vector<4x8x8xbf16>
    "tpu.trace_start"() <{level = 10 : i32, message = "hqd,hkd->hqk"}> : () -> ()
    %cst_19 = arith.constant dense<0.000000e+00> : vector<4x8x8xf32>
    %42 = tpu.matmul %35, %38, %cst_19 {dimension_numbers = #tpu.dot_dimension_numbers<[2], [2], [1], [1], [0, 0, 0, 1, 1, 1], [0], [0]>} : vector<4x8x8xbf16>, vector<4x8x8xbf16>, vector<4x8x8xf32> -> vector<4x8x8xf32>
    "tpu.trace_stop"() : () -> ()
    %cst_20 = arith.constant 0.353553385 : f32
    %43 = vector.broadcast %cst_20 : f32 to vector<4x8x8xf32>
    %44 = arith.mulf %42, %43 : vector<4x8x8xf32>
    %cst_21 = arith.constant dense<0xFF800000> : vector<4x8xf32>
    %45 = vector.multi_reduction <maximumf>, %44, %cst_21 [2] : vector<4x8x8xf32> to vector<4x8xf32>
    %46 = vector.shape_cast %45 : vector<4x8xf32> to vector<4x8x1xf32>
    %47 = vector.broadcast %46 : vector<4x8x1xf32> to vector<4x8x8xf32>
    %48 = arith.subf %44, %47 : vector<4x8x8xf32>
    %49 = math.exp %48 : vector<4x8x8xf32>
    %cst_22 = arith.constant dense<0.000000e+00> : vector<4x8xf32>
    %50 = vector.multi_reduction <add>, %49, %cst_22 [2] : vector<4x8x8xf32> to vector<4x8xf32>
    %51 = vector.shape_cast %50 : vector<4x8xf32> to vector<4x8x1xf32>
    %52 = tpu.reciprocal %51 {approx = true} : vector<4x8x1xf32> -> vector<4x8x1xf32>
    %53 = vector.broadcast %52 : vector<4x8x1xf32> to vector<4x8x8xf32>
    %54 = arith.mulf %49, %53 : vector<4x8x8xf32>
    %55 = arith.truncf %54 : vector<4x8x8xf32> to vector<4x8x8xbf16>
    "tpu.trace_start"() <{level = 10 : i32, message = "hqk,hkd->hqd"}> : () -> ()
    %cst_23 = arith.constant dense<0.000000e+00> : vector<4x8x8xf32>
    %56 = tpu.matmul %55, %41, %cst_23 {dimension_numbers = #tpu.dot_dimension_numbers<[2], [1], [1], [2], [0, 0, 0, 1, 1, 2], [0], [0]>} : vector<4x8x8xbf16>, vector<4x8x8xbf16>, vector<4x8x8xf32> -> vector<4x8x8xf32>
    "tpu.trace_stop"() : () -> ()
    %57 = tpu.transpose %56, [1, 0, 2] : vector<4x8x8xf32> -> vector<8x4x8xf32>
    %58 = vector.shape_cast %57 : vector<8x4x8xf32> to vector<8x32xf32>
    %59 = arith.truncf %58 : vector<8x32xf32> to vector<8x32xbf16>
    %c0_24 = arith.constant 0 : index
    %c0_25 = arith.constant 0 : index
    %c0_26 = arith.constant 0 : index
    %60 = vector.load %arg6[%c0_24, %c0_25, %c0_26] : memref<1x32x32xbf16, #tpu.memory_space<vmem>>, vector<1x32x32xbf16>
    %61 = vector.shape_cast %60 : vector<1x32x32xbf16> to vector<32x32xbf16>
    %cst_27 = arith.constant dense<0.000000e+00> : vector<8x32xf32>
    %62 = tpu.matmul %59, %61, %cst_27 {dimension_numbers = #tpu.dot_dimension_numbers<[1], [0], [0], [1], [0, 0, 1, 1], [], []>} : vector<8x32xbf16>, vector<32x32xbf16>, vector<8x32xf32> -> vector<8x32xf32>
    %63 = vector.broadcast %9 : vector<1x32xf32> to vector<8x32xf32>
    %64 = arith.addf %62, %63 : vector<8x32xf32>
    %65 = arith.addf %3, %64 : vector<8x32xf32>
    %cst_28 = arith.constant dense<0.000000e+00> : vector<8xf32>
    %66 = vector.multi_reduction <add>, %65, %cst_28 [1] : vector<8x32xf32> to vector<8xf32>
    %67 = vector.shape_cast %66 : vector<8xf32> to vector<8x1xf32>
    %cst_29 = arith.constant 3.200000e+01 : f32
    %68 = vector.broadcast %cst_29 : f32 to vector<8x1xf32>
    %69 = arith.divf %67, %68 : vector<8x1xf32>
    %70 = vector.broadcast %69 : vector<8x1xf32> to vector<8x32xf32>
    %71 = arith.subf %65, %70 : vector<8x32xf32>
    %72 = arith.mulf %71, %71 : vector<8x32xf32>
    %cst_30 = arith.constant dense<0.000000e+00> : vector<8xf32>
    %73 = vector.multi_reduction <add>, %72, %cst_30 [1] : vector<8x32xf32> to vector<8xf32>
    %74 = vector.shape_cast %73 : vector<8xf32> to vector<8x1xf32>
    %cst_31 = arith.constant 3.200000e+01 : f32
    %75 = vector.broadcast %cst_31 : f32 to vector<8x1xf32>
    %76 = arith.divf %74, %75 : vector<8x1xf32>
    %77 = vector.broadcast %69 : vector<8x1xf32> to vector<8x32xf32>
    %78 = arith.subf %65, %77 : vector<8x32xf32>
    %cst_32 = arith.constant 9.99999974E-6 : f32
    %79 = vector.broadcast %cst_32 : f32 to vector<8x1xf32>
    %80 = arith.addf %76, %79 : vector<8x1xf32>
    %81 = math.rsqrt %80 : vector<8x1xf32>
    %82 = vector.broadcast %81 : vector<8x1xf32> to vector<8x32xf32>
    %83 = arith.mulf %78, %82 : vector<8x32xf32>
    %84 = vector.broadcast %10 : vector<1x32xf32> to vector<8x32xf32>
    %85 = arith.mulf %83, %84 : vector<8x32xf32>
    %86 = vector.broadcast %11 : vector<1x32xf32> to vector<8x32xf32>
    %87 = arith.addf %85, %86 : vector<8x32xf32>
    %88 = arith.truncf %87 : vector<8x32xf32> to vector<8x32xbf16>
    %c0_33 = arith.constant 0 : index
    %c0_34 = arith.constant 0 : index
    %c0_35 = arith.constant 0 : index
    %89 = vector.load %arg7[%c0_33, %c0_34, %c0_35] : memref<1x32x64xbf16, #tpu.memory_space<vmem>>, vector<1x32x64xbf16>
    %90 = vector.shape_cast %89 : vector<1x32x64xbf16> to vector<32x64xbf16>
    %cst_36 = arith.constant dense<0.000000e+00> : vector<8x64xf32>
    %91 = tpu.matmul %88, %90, %cst_36 {dimension_numbers = #tpu.dot_dimension_numbers<[1], [0], [0], [1], [0, 0, 1, 1], [], []>} : vector<8x32xbf16>, vector<32x64xbf16>, vector<8x64xf32> -> vector<8x64xf32>
    %92 = vector.broadcast %16 : vector<1x64xf32> to vector<8x64xf32>
    %93 = arith.addf %91, %92 : vector<8x64xf32>
    %cst_37 = arith.constant 0.000000e+00 : f32
    %94 = vector.broadcast %cst_37 : f32 to vector<8x64xf32>
    %95 = arith.maximumf %93, %94 : vector<8x64xf32>
    %96 = arith.truncf %95 : vector<8x64xf32> to vector<8x64xbf16>
    %c0_38 = arith.constant 0 : index
    %c0_39 = arith.constant 0 : index
    %c0_40 = arith.constant 0 : index
    %97 = vector.load %arg8[%c0_38, %c0_39, %c0_40] : memref<1x64x32xbf16, #tpu.memory_space<vmem>>, vector<1x64x32xbf16>
    %98 = vector.shape_cast %97 : vector<1x64x32xbf16> to vector<64x32xbf16>
    %cst_41 = arith.constant dense<0.000000e+00> : vector<8x32xf32>
    %99 = tpu.matmul %96, %98, %cst_41 {dimension_numbers = #tpu.dot_dimension_numbers<[1], [0], [0], [1], [0, 0, 1, 1], [], []>} : vector<8x64xbf16>, vector<64x32xbf16>, vector<8x32xf32> -> vector<8x32xf32>
    %100 = vector.broadcast %12 : vector<1x32xf32> to vector<8x32xf32>
    %101 = arith.addf %99, %100 : vector<8x32xf32>
    %102 = arith.addf %87, %101 : vector<8x32xf32>
    %cst_42 = arith.constant dense<0.000000e+00> : vector<8xf32>
    %103 = vector.multi_reduction <add>, %102, %cst_42 [1] : vector<8x32xf32> to vector<8xf32>
    %104 = vector.shape_cast %103 : vector<8xf32> to vector<8x1xf32>
    %cst_43 = arith.constant 3.200000e+01 : f32
    %105 = vector.broadcast %cst_43 : f32 to vector<8x1xf32>
    %106 = arith.divf %104, %105 : vector<8x1xf32>
    %107 = vector.broadcast %106 : vector<8x1xf32> to vector<8x32xf32>
    %108 = arith.subf %102, %107 : vector<8x32xf32>
    %109 = arith.mulf %108, %108 : vector<8x32xf32>
    %cst_44 = arith.constant dense<0.000000e+00> : vector<8xf32>
    %110 = vector.multi_reduction <add>, %109, %cst_44 [1] : vector<8x32xf32> to vector<8xf32>
    %111 = vector.shape_cast %110 : vector<8xf32> to vector<8x1xf32>
    %cst_45 = arith.constant 3.200000e+01 : f32
    %112 = vector.broadcast %cst_45 : f32 to vector<8x1xf32>
    %113 = arith.divf %111, %112 : vector<8x1xf32>
    %114 = vector.broadcast %106 : vector<8x1xf32> to vector<8x32xf32>
    %115 = arith.subf %102, %114 : vector<8x32xf32>
    %cst_46 = arith.constant 9.99999974E-6 : f32
    %116 = vector.broadcast %cst_46 : f32 to vector<8x1xf32>
    %117 = arith.addf %113, %116 : vector<8x1xf32>
    %118 = math.rsqrt %117 : vector<8x1xf32>
    %119 = vector.broadcast %118 : vector<8x1xf32> to vector<8x32xf32>
    %120 = arith.mulf %115, %119 : vector<8x32xf32>
    %121 = vector.broadcast %13 : vector<1x32xf32> to vector<8x32xf32>
    %122 = arith.mulf %120, %121 : vector<8x32xf32>
    %123 = vector.broadcast %14 : vector<1x32xf32> to vector<8x32xf32>
    %124 = arith.addf %122, %123 : vector<8x32xf32>
    %c0_47 = arith.constant 0 : index
    %c0_48 = arith.constant 0 : index
    %125 = vector.load %arg14[%c0_47, %c0_48] : memref<8x32xf32, #tpu.memory_space<vmem>>, vector<8x32xf32>
    tpu.vector_store %arg14[%c0_47, %c0_48], %124 {strides = array<i32>} : memref<8x32xf32, #tpu.memory_space<vmem>>, vector<8x32xf32>,
    %c1_i32 = arith.constant 1 : i32
    %126 = arith.cmpi eq, %arg1, %c1_i32 : i32
    %127 = arith.extui %126 : i1 to i32
    %c0_i32_49 = arith.constant 0 : i32
    %128 = arith.cmpi ne, %127, %c0_i32_49 : i32
    scf.if %128 {
      %cst_50 = arith.constant dense<0.000000e+00> : vector<32xf32>
      %129 = vector.multi_reduction <add>, %124, %cst_50 [0] : vector<8x32xf32> to vector<32xf32>
      %130 = vector.shape_cast %129 : vector<32xf32> to vector<1x32xf32>
      %cst_51 = arith.constant 8.000000e+00 : f32
      %131 = vector.broadcast %cst_51 : f32 to vector<1x32xf32>
      %132 = arith.divf %130, %131 : vector<1x32xf32>
      %133 = arith.truncf %132 : vector<1x32xf32> to vector<1x32xbf16>
      %c0_52 = arith.constant 0 : index
      %c0_53 = arith.constant 0 : index
      %134 = vector.load %arg11[%c0_52, %c0_53] : memref<32x2xbf16, #tpu.memory_space<vmem>>, vector<32x2xbf16>
      %cst_54 = arith.constant dense<0.000000e+00> : vector<1x2xf32>
      %135 = tpu.matmul %133, %134, %cst_54 {dimension_numbers = #tpu.dot_dimension_numbers<[1], [0], [0], [1], [0, 0, 1, 1], [], []>} : vector<1x32xbf16>, vector<32x2xbf16>, vector<1x2xf32> -> vector<1x2xf32>
      %c0_55 = arith.constant 0 : index
      %c0_56 = arith.constant 0 : index
      %136 = vector.load %arg12[%c0_55, %c0_56] : memref<1x2xf32, #tpu.memory_space<vmem>>, vector<1x2xf32>
      %137 = arith.addf %135, %136 : vector<1x2xf32>
      %c0_57 = arith.constant 0 : index
      %c0_58 = arith.constant 0 : index
      %c0_59 = arith.constant 0 : index
      %138 = vector.load %arg13[%c0_57, %c0_58, %c0_59] : memref<1x1x2xf32, #tpu.memory_space<vmem>>, vector<1x1x2xf32>
      %139 = vector.shape_cast %138 : vector<1x1x2xf32> to vector<1x2xf32>
      %140 = vector.shape_cast %137 : vector<1x2xf32> to vector<1x1x2xf32>
      tpu.vector_store %arg13[%c0_57, %c0_58, %c0_59], %140 {strides = array<i32>} : memref<1x1x2xf32, #tpu.memory_space<vmem>>, vector<1x1x2xf32>,
    } else {
    }
    return
  }
  func.func @transform_0(%arg0: i32, %arg1: i32) -> (i32, i32, i32) {
    %c0_i32 = arith.constant 0 : i32
    %c0_i32_0 = arith.constant 0 : i32
    %c0_i32_1 = arith.constant 0 : i32
    return %arg0, %c0_i32, %c0_i32_0 : i32, i32, i32
  }
  func.func @transform_1(%arg0: i32, %arg1: i32) -> (i32, i32, i32) {
    %c0_i32 = arith.constant 0 : i32
    %c0_i32_0 = arith.constant 0 : i32
    %c0_i32_1 = arith.constant 0 : i32
    return %arg1, %c0_i32, %c0_i32_0 : i32, i32, i32
  }
  func.func @transform_2(%arg0: i32, %arg1: i32) -> (i32, i32, i32) {
    %c0_i32 = arith.constant 0 : i32
    %c0_i32_0 = arith.constant 0 : i32
    %c0_i32_1 = arith.constant 0 : i32
    return %arg1, %c0_i32, %c0_i32_0 : i32, i32, i32
  }
  func.func @transform_3(%arg0: i32, %arg1: i32) -> (i32, i32, i32) {
    %c0_i32 = arith.constant 0 : i32
    %c0_i32_0 = arith.constant 0 : i32
    %c0_i32_1 = arith.constant 0 : i32
    return %arg1, %c0_i32, %c0_i32_0 : i32, i32, i32
  }
  func.func @transform_4(%arg0: i32, %arg1: i32) -> (i32, i32, i32) {
    %c0_i32 = arith.constant 0 : i32
    %c0_i32_0 = arith.constant 0 : i32
    %c0_i32_1 = arith.constant 0 : i32
    return %arg1, %c0_i32, %c0_i32_0 : i32, i32, i32
  }
  func.func @transform_5(%arg0: i32, %arg1: i32) -> (i32, i32, i32) {
    %c0_i32 = arith.constant 0 : i32
    %c0_i32_0 = arith.constant 0 : i32
    %c0_i32_1 = arith.constant 0 : i32
    return %arg1, %c0_i32, %c0_i32_0 : i32, i32, i32
  }
  func.func @transform_6(%arg0: i32, %arg1: i32) -> (i32, i32, i32) {
    %c0_i32 = arith.constant 0 : i32
    %c0_i32_0 = arith.constant 0 : i32
    %c0_i32_1 = arith.constant 0 : i32
    return %arg1, %c0_i32, %c0_i32_0 : i32, i32, i32
  }
  func.func @transform_7(%arg0: i32, %arg1: i32) -> (i32, i32, i32) {
    %c0_i32 = arith.constant 0 : i32
    %c0_i32_0 = arith.constant 0 : i32
    %c0_i32_1 = arith.constant 0 : i32
    return %arg1, %c0_i32, %c0_i32_0 : i32, i32, i32
  }
  func.func @transform_8(%arg0: i32, %arg1: i32) -> (i32, i32, i32) {
    %c0_i32 = arith.constant 0 : i32
    %c0_i32_0 = arith.constant 0 : i32
    %c0_i32_1 = arith.constant 0 : i32
    return %arg1, %c0_i32, %c0_i32_0 : i32, i32, i32
  }
  func.func @transform_9(%arg0: i32, %arg1: i32) -> (i32, i32) {
    %c0_i32 = arith.constant 0 : i32
    %c0_i32_0 = arith.constant 0 : i32
    %c0_i32_1 = arith.constant 0 : i32
    return %c0_i32, %c0_i32_0 : i32, i32
  }
  func.func @transform_10(%arg0: i32, %arg1: i32) -> (i32, i32) {
    %c0_i32 = arith.constant 0 : i32
    %c0_i32_0 = arith.constant 0 : i32
    %c0_i32_1 = arith.constant 0 : i32
    return %c0_i32, %c0_i32_0 : i32, i32
  }
  func.func @transform_11(%arg0: i32, %arg1: i32) -> (i32, i32, i32) {
    %c0_i32 = arith.constant 0 : i32
    %c0_i32_0 = arith.constant 0 : i32
    %c0_i32_1 = arith.constant 0 : i32
    return %arg0, %c0_i32, %c0_i32_0 : i32, i32, i32
  }
}

</mosaic_0001>

<bundles_post_ra>
// kernel: tpu_custom_call.1
= control target key start
LH: loop header
LB: loop body
LE: loop exit
PB: predicated region body
PF: predicated region fallthrough
CT: control target
= control target key end

     0   :  { %s3547_s0 = inlined_call_operand.hbm [shape: f32[2,8,32], index: 0, kind: input, shape index: {}]   ;;  %s3548_s1 = inlined_call_operand.vmem [shape: bf16[2,32,32], index: 1, kind: input, shape index: {}]   ;;  %s3549_s2 = inlined_call_operand.vmem [shape: bf16[2,32,32], index: 2, kind: input, shape index: {}]   ;;  %s3550_s3 = inlined_call_operand.vmem [shape: bf16[2,32,32], index: 3, kind: input, shape index: {}]   ;;  %s3551_s4 = inlined_call_operand.vmem [shape: bf16[2,32,32], index: 4, kind: input, shape index: {}]   ;;  %s3552_s5 = inlined_call_operand.hbm [shape: bf16[2,32,64], index: 5, kind: input, shape index: {}]   ;;  %s3553_s6 = inlined_call_operand.vmem [shape: bf16[2,64,32], index: 6, kind: input, shape index: {}]   ;;  %s3554_s7 = inlined_call_operand.vmem [shape: f32[2,9,32], index: 7, kind: input, shape index: {}]   ;;  %s3555_s8 = inlined_call_operand.vmem [shape: f32[2,1,64], index: 8, kind: input, shape index: {}]   ;;  %s3556_s9 = inlined_call_operand.vmem [shape: bf16[32,2], index: 9, kind: input, shape index: {}]   ;;  %s3557_s10 = inlined_call_operand.vmem [shape: f32[1,2], index: 10, kind: input, shape index: {}]   ;;  %s3558_s11 = inlined_call_operand.hbm [shape: f32[2,1,2], index: 11, kind: output, shape index: {}]  }
   0x1   :  { %3576 = sst [smem:[#allocation24_spill]] %s3547_s0 }
   0x2   :  { %3577 = sst [smem:[#allocation25_spill]] %s3548_s1 }
   0x3   :  { %3578 = sst [smem:[#allocation26_spill]] %s3549_s2 }
   0x4   :  { %3579 = sst [smem:[#allocation27_spill]] %s3552_s5 }
   0x5   :  { %3580 = sst [smem:[#allocation28_spill]] %s3555_s8 }
   0x6   :  { %3581 = sst [smem:[#allocation29_spill]] %s3556_s9 }
   0x7   :  { %3582 = sst [smem:[#allocation30_spill]] %s3557_s10 }
   0x8   :  { %3583 = sst [smem:[#allocation31_spill]] %s3558_s11 }
   0x9   :  { %16 = vsyncpa [#allocation4], 0 }
   0xa   :  { %18 = vsyncpa [#allocation4 + $0x1], 0 }
   0xb   :  { %19 = vsyncpa [#allocation7], 0 }
   0xc   :  { %21 = vsyncpa [#allocation7 + $0x1], 0 }
   0xd   :  { %22 = vsyncpa [#allocation5], 0 }
   0xe   :  { %24 = vsyncpa [#allocation5 + $0x1], 0  ;;  %s2987_s17 = smov 0   ;;  %s2989_s18 = smov 0  }
   0xf   :  { %s2991_s19 = smov 0   ;;  %s2993_s20 = smov 0  }
  0x10   :  { %s2995_s21 = smov 0   ;;  %s2997_s22 = smov 0  }
  0x11   :  { %s2999_s23 = smov 0   ;;  %s3001_s24 = smov 0  }
  0x12   :  { %s3003_s25 = smov 0   ;;  %s3005_s26 = smov 0  }
  0x13   :  { %s3007_s27 = smov 0  }
  0x14 LB: > { %3584 = sst [smem:[#allocation12_spill]] %s2880_s20  ;;  %s2341_s28 = sadd.s32 4294967295, %s2908_s27   ;;  %s2908_s27 = sphi %s3007_s27, %s30_s27   ;;  %s2904_s26 = sphi %s3005_s26, %s3635_s26   ;;  %s2900_s25 = sphi %s3003_s25, %s3634_s25   ;;  %s2896_s24 = sphi %s3001_s24, %s3633_s24   ;;  %s2892_s23 = sphi %s2999_s23, %s3632_s23   ;;  %s2888_s22 = sphi %s2997_s22, %s3631_s22   ;;  %s2884_s21 = sphi %s2995_s21, %s3630_s21   ;;  %s2880_s20 = sphi %s2993_s20, %s3629_s20   ;;  %s2876_s19 = sphi %s2991_s19, %s3638_s19   ;;  %s2872_s18 = sphi %s2989_s18, %s3637_s18   ;;  %s2868_s17 = sphi %s2987_s17, %s3636_s17  }
  0x15   : > { %3585 = sst [smem:[#allocation13_spill]] %s2884_s21  ;;  %s2342_s29 = sadd.s32 4294967294, %s2908_s27  }
  0x16   : > { %3586 = sst [smem:[#allocation14_spill]] %s2888_s22  ;;  %p56_p0 = scmp.ne.s32.totalorder %s2888_s22, %s2884_s21 }
  0x17   : > { %3587 = sst [smem:[#allocation15_spill]] %s2896_s24  ;;  %p57_p1 = scmp.eq.s32.totalorder %s2908_s27, 0 }
  0x18   : > { %3588 = sst [smem:[#allocation16_spill]] %s2900_s25  ;;  %p62_p2 = scmp.ne.s32.totalorder %s2884_s21, %s2880_s20 }
  0x19   : > { %3589 = sst [smem:[#allocation17_spill]] %s2904_s26  ;;  %p63_p3 = scmp.eq.s32.totalorder %s2341_s28, 0 }
  0x1a   : > { %3590 = sst [smem:[#allocation18_spill]] %s2908_s27  ;;  %p3049_p4 = por %p57_p1, %p56_p0 }
  0x1b   : > { %p186_p5 = scmp.ne.s32.totalorder %s2876_s19, %s2872_s18  ;;  %p3055_p6 = por %p63_p3, %p62_p2 }
  0x1c   : > { %p192_p7 = scmp.ne.s32.totalorder %s2872_s18, %s2868_s17  ;;  %p336_p9 = scmp.eq.s32.totalorder %s2341_s28, 3 }
  0x1d   : > { %s3592_s14 = scalar_select %p3055_p6, 1, 0 }
  0x1e   : > { %p3060_p8 = por %p186_p5, %p57_p1  ;;  %p3064_p10 = por %p192_p7, %p63_p3 }
  0x1f   : > { %p342_p11 = scmp.eq.s32.totalorder %s2342_s29, 3  ;;  %p3068_p12 = por %p336_p9, %p56_p0 }
  0x20   : > { %s3594_s16 = scalar_select %p3064_p10, 1, 0 }
  0x21   : > { %s3595_s12 = scalar_select %p3068_p12, 1, 0 }
  0x22   : > { %p3072_p13 = por %p342_p11, %p62_p2  ;;  %p2582_p1 = scmp.lt.s32.totalorder %s2908_s27, 4 }
  0x23   : > { %3596 = sst [smem:[#allocation19_spill]] %s3595_s12  ;;  %s368_s17 = sand.u32 1, %s2888_s22  }
  0x24   : > { %s3597_s30 = scalar_select %p3072_p13, 1, 0 }
  0x25   : > { %s2346_s20 = sshll.u32 %s2904_s26, 7  ;;  %s2345_s11 = sshll.u32 %s368_s17, 3 }
  0x26   : > { %3598 = sst [smem:[#allocation20_spill]] %s3597_s30  ;;  %s3599_s0 = sld [smem:[#allocation24_spill]] }
  0x27   : > { %s372_s29 = scalar_lea.vmem [#allocation3], %s2345_s11  ;;  %p3086_p0 = pnand %p2582_p1, %p3049_p4 }
  0x28   : > { %s379_s9 = sshll.u32 %s372_s29, 4  ;;  %p3094_p2 = pnand %p2582_p1, %p3060_p8  ;;  %s3090_s9 = int_to_ptr.vmem [resolvable:$true] %s379_s9 }
  0x29   : > { %p2724_p7 = pneg %p3086_p0 }
  0x2c   : > { %s3082_s28 = scalar_lea.hbm %s3599_s0, %s2346_s20  ;;  %s369_s20 = scalar_lea.sflag [#allocation4], %s368_s17 }
  0x2d   : > { %s2722_s24 = scalar_lea.hbm %s3082_s28, 128  ;;  %s2727_s29 = scalar_lea.hbm %s3599_s0, 256 }
  0x2e   : > { %p2723_p5 = scmp.ne.s32.totalorder %s3082_s28, %s2722_s24  ;;  %p2728_p8 = scmp.lt.u32.totalorder %s3082_s28, %s3599_s0 }
  0x2f   : > { %p2729_p11 = scmp.lt.u32.totalorder %s2727_s29, %s2722_s24  ;;  %p2731_p3 = scmp.lt.u32.totalorder %s2722_s24, %s3082_s28 }
  0x30   : > { %p2725_p4 = pnand %p2724_p7, %p2723_p5 }
  0x31   : > { %p2730_p1 = por %p2729_p11, %p2728_p8 }
  0x32   : > { %p2726_p9 = pneg %p2725_p4 }
  0x33   : > { %p2732_p13 = por %p2731_p3, %p2730_p1 }
  0x35   : > { %p2733_p12 = pnand %p2732_p13, %p2726_p9 }
  0x37   : > { %2736 = shalt.err (!%p2733_p12)
}
  0x38   : > { %s2737_s17 = scalar_lea.vmem %s3090_s9, 128  ;;  %s2910_s11 = smov [#allocation3]  }
  0x39   : > { %p2738_p5 = scmp.ne.s32.totalorder %s3090_s9, %s2737_s17  ;;  %s2742_s13 = sshll.u32 %s2910_s11, 4  ;;  %s2743_s13 = int_to_ptr.vmem [resolvable:$false] %s2742_s13 }
  0x3a   : > { %s2744_s30 = scalar_lea.vmem %s2743_s13, 256  ;;  %p2745_p6 = scmp.lt.s32.totalorder %s3090_s9, %s2743_s13 }
  0x3b   : > { %p2740_p4 = pnand %p2738_p5, %p2724_p7  ;;  %p2746_p8 = scmp.lt.s32.totalorder %s2744_s30, %s2737_s17 }
  0x3d   : > { %p2741_p10 = pneg %p2740_p4  ;;  %p2747_p11 = por %p2746_p8, %p2745_p6 }
  0x3f   : > { %p2748_p3 = pnand %p2747_p11, %p2741_p10 }
  0x41   : > { %2751 = shalt.err (!%p2748_p3)
}
  0x42   : > { %2574 = dma.hbm_to_vmem [thread:$0]  (!%p3086_p0), %s3082_s28, 128, %s3090_s9, %s369_s20  }
  0x43   : > { %p459_p12 = scmp.lt.s32.totalorder %s2908_s27, 5  ;;  %s179_s24 = sadd.s32 1, %s2876_s19 }
  0x44   : > { %p3602_p13 = scmp.ge.s32.totalorder %s2908_s27, 1  ;;  %s39_s12 = sadd.s32 1, %s2900_s25 }
  0x45   : > { %s418_s15 = sand.u32 1, %s2876_s19   ;;  %p40_p10 = scmp.ge.s32.totalorder %s39_s12, 2 }
  0x46   : > { %p3128_p6 = pnand %p3602_p13, %p459_p12  ;;  %s2347_s17 = sshll.u32 %s418_s15, 4 }
  0x47   : > { %s2411_s11 = sshll.u32 %s2900_s25, 8  ;;  %s3640_s12 = smov (%p40_p10, %s39_s12), 0 }
  0x48   : > { %3604 = sst [smem:[#allocation21_spill]] %s3640_s12  ;;  %s3605_s13 = sadd.s32 1, %s2904_s26 }
  0x49   : > { %s3642_s13 = smov (!%p40_p10, %s3605_s13), %s2904_s26  ;;  %s176_s9 = ssub.s32 %s2900_s25, %s3640_s12 }
  0x4a   : > { %p44_p0 = scmp.ge.s32.totalorder %s3642_s13, 2  ;;  %p177_p7 = scmp.eq.s32.totalorder %s176_s9, 0 }
  0x4b   : > { %s3606_s5 = sld [smem:[#allocation27_spill]]  ;;  %s422_s0 = scalar_lea.vmem [#allocation6], %s2347_s17 }
  0x4c   : > { %s429_s27 = sshll.u32 %s422_s0, 4  ;;  %s3644_s13 = smov (%p44_p0, %s3642_s13), 0  ;;  %s3154_s27 = int_to_ptr.vmem [resolvable:$true] %s429_s27 }
  0x4d   : > { %3607 = sst [smem:[#allocation22_spill]] %s3644_s13  ;;  %s46_s12 = ssub.s32 %s2904_s26, %s3644_s13 }
  0x4e   : > { %s3150_s8 = scalar_select %p177_p7, %s2876_s19, %s179_s24  }
  0x4f   : > { %p47_p9 = scmp.eq.s32.totalorder %s46_s12, 0  ;;  %s3608_s9 = sadd.s32 1, %s2888_s22 }
  0x50   : > { %p2754_p5 = pneg %p3094_p2 }
  0x51   : > { %s3145_s30 = scalar_lea.hbm %s3606_s5, %s2411_s11  ;;  %s3161_s11 = scalar_lea.sflag [#allocation7], %s418_s15 }
  0x52   : > { %s3159_s25 = scalar_select %p47_p9, %s2888_s22, %s3608_s9  }
  0x53   : > { %s2752_s28 = scalar_lea.hbm %s3145_s30, 256  ;;  %s2757_s17 = scalar_lea.hbm %s3606_s5, 512 }
  0x54   : > { %3609 = sst [smem:[#allocation23_spill]] %s3159_s25  ;;  %p2753_p1 = scmp.ne.s32.totalorder %s3145_s30, %s2752_s28 }
  0x55   : > { %p2758_p11 = scmp.lt.u32.totalorder %s3145_s30, %s3606_s5  ;;  %p2759_p3 = scmp.lt.u32.totalorder %s2757_s17, %s2752_s28 }
  0x56   : > { %p2755_p4 = pnand %p2754_p5, %p2753_p1  ;;  %p2761_p13 = scmp.lt.u32.totalorder %s2752_s28, %s3145_s30 }
  0x57   : > { %p2760_p12 = por %p2759_p3, %p2758_p11 }
  0x58   : > { %p2756_p8 = pneg %p2755_p4 }
  0x59   : > { %p2762_p10 = por %p2761_p13, %p2760_p12 }
  0x5b   : > { %p2763_p0 = pnand %p2762_p10, %p2756_p8 }
  0x5d   : > { %2766 = shalt.err (!%p2763_p0)
}
  0x5e   : > { %s2767_s12 = scalar_lea.vmem %s3154_s27, 256  ;;  %s2911_s15 = smov [#allocation6]  }
  0x5f   : > { %p2768_p7 = scmp.ne.s32.totalorder %s3154_s27, %s2767_s12  ;;  %s2772_s9 = sshll.u32 %s2911_s15, 4  ;;  %s2773_s9 = int_to_ptr.vmem [resolvable:$false] %s2772_s9 }
  0x60   : > { %s2774_s13 = scalar_lea.vmem %s2773_s9, 512  ;;  %p2775_p4 = scmp.lt.s32.totalorder %s3154_s27, %s2773_s9 }
  0x61   : > { %p2770_p9 = pnand %p2768_p7, %p2754_p5  ;;  %p2776_p11 = scmp.lt.s32.totalorder %s2774_s13, %s2767_s12 }
  0x63   : > { %p2771_p1 = pneg %p2770_p9  ;;  %p2777_p3 = por %p2776_p11, %p2775_p4 }
  0x65   : > { %p2778_p12 = pnand %p2777_p3, %p2771_p1 }
  0x67   : > { %2781 = shalt.err (!%p2778_p12)
}
  0x68   : > { %s2912_s28 = smov 64   ;;  %s2913_s0 = smov 4  }
  0x69   : > { %2577 = dma.hbm_to_vmem [thread:$0]  (!%p3094_p2), %s3145_s30, 256, %s3154_s27, %s3161_s11, %s2912_s28, %s2912_s28, %s2913_s0  }
  0x6a   : > { %463 = sbr.rel (%p3128_p6) target bundleno = 2976 (0xba0), region = 64  ;;  %s3192_s24 = sand.u32 (!%p3128_p6), 1, %s2884_s21  }
  0x6b   : > { %s2351_s17 = sshll.u32 (!%p3128_p6), %s3192_s24, 3  ;;  %s466_s20 = scalar_lea.sflag (!%p3128_p6), [#allocation4], %s3192_s24 }
  0x6c   : > { %s469_s12 = scalar_lea.vmem (!%p3128_p6), [#allocation3], %s2351_s17  ;;  %p3610_p5 = scmp.ne.s32.totalorder (!%p3128_p6), %s3592_s14, 0 }
  0x71   : > { %2855 = dma.done.wait (%p3610_p5), %s466_s20, 128  }
  0x72   : > { %2857 = vsyncadd (%p3610_p5), %s466_s20, 4294967168  ;;  %s474_s27 = sand.u32 1, %s2872_s18   ;;  %p3611_p2 = scmp.ne.s32.totalorder %s3594_s16, 0 }
  0x73   : > { %s3201_s10 = sshll.u32 %s474_s27, 4  ;;  %s475_s29 = scalar_lea.sflag [#allocation7], %s474_s27 }
  0x74   : > { %2859 = dma.done.wait (%p3611_p2), %s475_s29, 256  }
  0x75   : > { %2861 = vsyncadd (%p3611_p2), %s475_s29, 4294967040  ;;  %p554_p6 = scmp.lt.s32.totalorder %s2892_s23, 1  ;;  %s3612_s1 = sld [smem:[#allocation25_spill]] }
  0x76   : > { %s3613_s2 = sld [smem:[#allocation26_spill]]  ;;  %s3614_s20 = sld [smem:[#allocation28_spill]] }
  0x77   : > { %s3210_s11 = scalar_select %p554_p6, %s2892_s23, 1 }
  0x78   : > { %p2365_p8 = scmp.ne.s32.totalorder %s2892_s23, 0 }
  0x79   : > { %s2412_s14 = sshll.u32 %s3210_s11, 4  ;;  %s2416_s15 = sshll.u32 %s3210_s11, 5  ;;  %v592_v0 = vld [vmem:[%s469_s12] sm:$0xff] (!%p2365_p8)  ;;  %vm593_vm0 = vcmask (!%p2365_p8), 261120  }
  0x7a   : > { %s3223_s29 = scalar_lea.vmem %s3550_s3, %s2412_s14  ;;  %s3228_s26 = scalar_lea.vmem %s3551_s4, %s2412_s14  ;;  %594 = vst.msk [vmem:[#allocation2] sm:$0xff] (!%p2365_p8), %vm593_vm0, %v592_v0 }
  0x7b   : > { %s558_s28 = scalar_lea.vmem %s3612_s1, %s2412_s14  ;;  %s3233_s21 = scalar_lea.vmem %s3553_s6, %s2416_s15 }
  0x7c   : > { %s563_s16 = scalar_lea.vmem %s3613_s2, %s2412_s14  ;;  %s3238_s0 = scalar_lea.vmem %s3554_s7, %s2412_s14 }
  0x7d   : > { %s586_s27 = scalar_lea.vmem %s3614_s20, %s3210_s11  ;;  %s553_s2 = scalar_lea.vmem [#allocation8], %s3192_s24 }
  0x7e   : > { %591 = sbr.rel (%p2365_p8) target bundleno = 133 (0x85), region = 76 }
  0x85 PF: > { %v2686_v1 = vld [vmem:[%s563_s16] sm:$0xff]   ;;  %v2914_v2 = vmov 0.0   ;;  %v2688_v4 = vld [vmem:[%s563_s16 + $0x8] sm:$0xff]   ;;  %vm2915_vm1 = vmmov 0   ;;  %vm620_vm2 = vcmask 261120   ;;  %v604_v8 = vlaneseq  ;;  %s2916_s1 = smov 104  }
  0x86   : > { %2465 = vmatprep.subr.bf16.mxu1 %v2914_v2  ;;  %2457 = vmatprep.subr.bf16.mxu0 %v2914_v2  ;;  %v2687_v3 = vld [vmem:[%s558_s28] sm:$0xff]   ;;  %v2689_v6 = vld [vmem:[%s558_s28 + $0x8] sm:$0xff]   ;;  %s2917_s5 = smov 120   ;;  %s2918_s22 = smov 112   ;;  %v2919_v27 = vmov 1983009808  }
  0x87   : > { %2466 = vmatpush3.bf16.msra.mxu1 %v2686_v1  ;;  %2469 = vmatprep.mubr.msk.bf16.mxu1 %vm2915_vm1, %v2914_v2  ;;  %v3251_v5 = vld [vmem:[#allocation2] sm:$0xff]  ;;  %v3266_v9 = vshrl.u32 %v604_v8, 7  ;;  %v2691_v26 = vld [vmem:[%s3223_s29 + $0x8] sm:$0xff]   ;;  %v797_v28 = vunpack.c.l.s4 %v2919_v27  ;;  %v2920_v29 = vmov 1934713408   ;;  %vm1234_vm3 = vcmask 64512  }
  0x88   : > { %2467 = vmatprep.subr.bf16.mxu1 %v2914_v2  ;;  %2458 = vmatpush3.bf16.msra.mxu0 %v2687_v3  ;;  %v599_v7 = vpack.c.bf16 %v3251_v5, %v3251_v5  ;;  %v3270_v11 = vld [vmem:[%s3238_s0] sm:$0xff]  ;;  %v829_v30 = vunpack.c.l.s4 %v2920_v29  ;;  %vm1474_vm4 = vcmask 1043456   ;;  %s2921_s25 = smov 16   ;;  %s2923_s12 = smov 24   ;;  %vm1805_vm5 = vcmask 130048  }
  0x89   : > { %2459 = vmatprep.subr.bf16.mxu0 %v2914_v2  ;;  %2461 = vmatprep.mubr.msk.bf16.mxu0 %vm2915_vm1, %v2914_v2  ;;  %v670_v10 = vsub.s32 1, %v3266_v9  ;;  %v606_v12 = vsub.s32 0, %v3266_v9  ;;  %v2690_v19 = vld [vmem:[%s3223_s29] sm:$0xff]   ;;  %v798_v31 = vunpack.c.0.s8 %v797_v28  ;;  %vm1807_vm6 = vcmask 195584   ;;  %s3615_s30 = scalar_lea.vmem [#allocation6], %s3201_s10  ;;  %p2404_p13 = scmp.ne.s32.totalorder %s2892_s23, 1 }
  0x8a   : > { %v830_v34 = vunpack.c.0.s8 %v829_v30  ;;  %s3616_s14 = smov %s3615_s30  ;;  %vm2002_vm7 = vcmask 523264   ;;  %s3618_s16 = sld [smem:[#allocation29_spill]] (!%p2404_p13)  ;;  %vm2925_vm8 = vmmov (!%p2404_p13), 0   ;;  %vm2145_vm9 = vcmask (!%p2404_p13), 8192  }
  0x8b   : > { %2468 = vmatpush3.bf16.msra.mxu1 %v2688_v4  ;;  %v671_v13 = vrot.slane %v3270_v11, %v670_v10  ;;  %v607_v14 = vrot.slane %v3270_v11, %v606_v12  ;;  %v3289_v35 = vsub.s32 %v798_v31, %v3266_v9 }
  0x8c   : > { %2460 = vmatpush3.bf16.msra.mxu0 %v2689_v6  ;;  %2481 = vmatprep.subr.bf16.mxu1 %v2914_v2  ;;  %v3292_v42 = vsub.s32 %v830_v34, %v3266_v9 }
  0x8d   : > { %2473 = vmatprep.subr.bf16.mxu0 %v2914_v2 }
  0x8e   : > { %2470 = vmatmul.mubr.msk.bf16.vlgmr.msra.gmra.mrb[0].mxu1 %vm620_vm2, %v599_v7 }
  0x8f   : > { %2462 = vmatmul.mubr.msk.bf16.vlgmr.msra.gmra.mrb[0].mxu0 %vm620_vm2, %v599_v7  ;;  %2483 = vmatprep.mubr.msk.bf16.mxu1 %vm2915_vm1, %v2914_v2 }
  0x90   : > { %2477 = vmatprep.mubr.msk.bf16.mxu0 %vm2915_vm1, %v2914_v2  ;;  %2474 = vmatpush3.bf16.msra.mxu0 %v2690_v19 }
  0x91   : > { %2475 = vmatprep.subr.bf16.mxu0 %v2914_v2 }
  0x94   : > { %2476 = vmatpush3.bf16.msra.mxu0 %v2691_v26 }
  0x95   : > { %2487 = vmatprep.subr.bf16.mxu0 %v2914_v2 }
  0x97   : > { %2478 = vmatmul.mubr.msk.bf16.vlgmr.msra.gmra.mrb[4].mxu0 %vm620_vm2, %v599_v7 }
  0x98   : > { %2489 = vmatprep.mubr.msk.bf16.mxu0 %vm2915_vm1, %v2914_v2 }
 0x161   : > { %v718_v15 = vpop.f32.mrb[0].mxu1 }
 0x162   : > { %v719_v16 = vadd.f32 %v718_v15, %v671_v13  ;;  %v2471_v17 = vpop.f32.mrb[1].mxu1  ;;  %v658_v18 = vpop.f32.mrb[0].mxu0 }
 0x163   : > { %v721_v20 = vpop.f32.mrb[2].mxu1  ;;  %v2463_v21 = vpop.f32.mrb[1].mxu0  ;;  %v659_v23 = vadd.f32 %v658_v18, %v607_v14 }
 0x164   : > { %941 = vrot.lane.b32.xlu1 %v719_v16, %s2916_s1  ;;  %935 = vrot.lane.b32.xlu0 %v719_v16, %s2917_s5  ;;  %v2472_v22 = vpop.f32.mrb[3].mxu1  ;;  %v661_v24 = vpop.f32.mrb[2].mxu0 }
 0x165   : > { %v2464_v25 = vpop.f32.mrb[3].mxu0 }
 0x168   : > { %938 = vrot.lane.b32.xlu0 %v719_v16, %s2918_s22  ;;  %785 = vrot.lane.b32.xlu1 %v659_v23, %s2917_s5 }
 0x16c   : > { %788 = vrot.lane.b32.xlu0 %v659_v23, %s2918_s22  ;;  %791 = vrot.lane.b32.xlu1 %v659_v23, %s2916_s1 }
 0x1d6   : > { %v942_v32 = vpop.permute.xlu1 %941  ;;  %v936_v33 = vpop.permute.xlu0 %935 }
 0x1d7   : > { %v960_v36 = vcombine.low %v936_v33, %v942_v32  ;;  %v961_v37 = vcombine.high %v936_v33, %v942_v32 }
 0x1d9   : > { %v968_v43 = vrot.slane %v960_v36, %v3289_v35  ;;  %v975_v44 = vrot.slane %v961_v37, %v3289_v35 }
 0x1da   : > { %v939_v38 = vpop.permute.xlu0 %938  ;;  %v786_v39 = vpop.permute.xlu1 %785 }
 0x1db   : > { %v944_v40 = vcombine.low %v719_v16, %v939_v38  ;;  %v945_v41 = vcombine.high %v719_v16, %v939_v38 }
 0x1dd   : > { %v952_v45 = vrot.slane %v944_v40, %v3289_v35  ;;  %v959_v46 = vrot.slane %v945_v41, %v3289_v35 }
 0x1de   : > { %v789_v47 = vpop.permute.xlu0 %788  ;;  %v792_v48 = vpop.permute.xlu1 %791 }
 0x1df   : > { %v976_v49 = vcombine.low %v952_v45, %v968_v43  ;;  %v977_v50 = vcombine.high %v952_v45, %v968_v43  ;;  %v992_v51 = vcombine.low %v959_v46, %v975_v44  ;;  %v993_v52 = vcombine.high %v959_v46, %v975_v44 }
 0x1e0   : > { %v794_v53 = vcombine.low %v659_v23, %v789_v47  ;;  %v795_v54 = vcombine.high %v659_v23, %v789_v47  ;;  %v810_v55 = vcombine.low %v786_v39, %v792_v48  ;;  %v811_v56 = vcombine.high %v786_v39, %v792_v48 }
 0x1e1   : > { %v984_v57 = vrot.slane %v976_v49, %v3292_v42  ;;  %v991_v58 = vrot.slane %v977_v50, %v3292_v42  ;;  %v1000_v59 = vrot.slane %v992_v51, %v3292_v42  ;;  %v1007_v60 = vrot.slane %v993_v52, %v3292_v42 }
 0x1e2   : > { %v802_v61 = vrot.slane %v794_v53, %v3289_v35  ;;  %v809_v62 = vrot.slane %v795_v54, %v3289_v35  ;;  %v818_v63 = vrot.slane %v810_v55, %v3289_v35  ;;  %v825_v0 = vrot.slane %v811_v56, %v3289_v35 }
 0x1e3   : > { %v1012_v1 = vcombine.low %v984_v57, %v991_v58  ;;  %v2377_v3 = vcombine.high %v984_v57, %v991_v58  ;;  %v1028_v4 = vcombine.low %v1000_v59, %v1007_v60  ;;  %v2378_v6 = vcombine.high %v1000_v59, %v1007_v60 }
 0x1e4   : > { %v826_v7 = vcombine.low %v802_v61, %v818_v63  ;;  %v827_v8 = vcombine.high %v802_v61, %v818_v63  ;;  %v842_v10 = vcombine.low %v809_v62, %v825_v0  ;;  %v843_v12 = vcombine.high %v809_v62, %v825_v0 }
 0x1e5   : > { %v1019_v13 = vrot.slane %v1012_v1, %v3289_v35  ;;  %v1027_v14 = vrot.slane %v2377_v3, %v3289_v35  ;;  %v1035_v15 = vrot.slane %v1028_v4, %v3289_v35  ;;  %v1043_v16 = vrot.slane %v2378_v6, %v3289_v35  ;;  %v778_v4 = vpop.f32.mrb[4].mxu0 }
 0x1e6   : > { %v834_v17 = vrot.slane %v826_v7, %v3292_v42  ;;  %v841_v18 = vrot.slane %v827_v8, %v3292_v42  ;;  %v850_v19 = vrot.slane %v842_v10, %v3292_v42  ;;  %v857_v20 = vrot.slane %v843_v12, %v3292_v42  ;;  %v2479_v6 = vpop.f32.mrb[5].mxu0 }
 0x1e7   : > { %v1044_v21 = vcombine.low %v1019_v13, %v1027_v14  ;;  %v1060_v22 = vcombine.low %v1035_v15, %v1043_v16  ;;  %v1045_v23 = vcombine.high %v1019_v13, %v1027_v14  ;;  %v1061_v24 = vcombine.high %v1035_v15, %v1043_v16  ;;  %v781_v7 = vpop.f32.mrb[6].mxu0 }
 0x1e8   : > { %v862_v25 = vcombine.low %v834_v17, %v841_v18  ;;  %v2375_v26 = vcombine.high %v834_v17, %v841_v18  ;;  %v878_v27 = vcombine.low %v850_v19, %v857_v20  ;;  %v2376_v28 = vcombine.high %v850_v19, %v857_v20  ;;  %v2480_v8 = vpop.f32.mrb[7].mxu0 }
 0x1e9   : > { %v1052_v29 = vrot.slane %v1044_v21, %v3292_v42  ;;  %v1068_v30 = vrot.slane %v1060_v22, %v3292_v42  ;;  %v1059_v38 = vrot.slane %v1045_v23, %v3292_v42  ;;  %v1075_v39 = vrot.slane %v1061_v24, %v3292_v42 }
 0x1ea   : > { %v869_v31 = vrot.slane %v862_v25, %v3289_v35  ;;  %v877_v32 = vrot.slane %v2375_v26, %v3289_v35  ;;  %v885_v33 = vrot.slane %v878_v27, %v3289_v35  ;;  %v893_v34 = vrot.slane %v2376_v28, %v3289_v35 }
 0x1eb   : > { %v1076_v36 = vcombine.low %v1052_v29, %v1068_v30  ;;  %v1077_v37 = vcombine.high %v1052_v29, %v1068_v30  ;;  %v1078_v49 = vcombine.low %v1059_v38, %v1075_v39  ;;  %v1079_v50 = vcombine.high %v1059_v38, %v1075_v39 }
 0x1ec   : > { %v894_v40 = vcombine.low %v869_v31, %v877_v32  ;;  %v910_v41 = vcombine.low %v885_v33, %v893_v34  ;;  %v895_v51 = vcombine.high %v869_v31, %v877_v32  ;;  %v911_v52 = vcombine.high %v885_v33, %v893_v34 }
 0x1ed   : > { %v1080_v43 = vpack.c.bf16 %v1076_v36, %v1076_v36  ;;  %v1081_v44 = vpack.c.bf16 %v1077_v37, %v1077_v37  ;;  %v1082_v55 = vpack.c.bf16 %v1078_v49, %v1078_v49  ;;  %v1083_v56 = vpack.c.bf16 %v1079_v50, %v1079_v50 }
 0x1ee   : > { %v902_v45 = vrot.slane %v894_v40, %v3292_v42  ;;  %v918_v46 = vrot.slane %v910_v41, %v3292_v42  ;;  %v909_v59 = vrot.slane %v895_v51, %v3292_v42  ;;  %v925_v60 = vrot.slane %v911_v52, %v3292_v42 }
 0x1ef   : > { %v1239_v47 = vsel %vm1234_vm3, %v1080_v43, 0  ;;  %v1285_v48 = vsel %vm1234_vm3, %v1081_v44, 0  ;;  %v1331_v61 = vsel %vm1234_vm3, %v1082_v55, 0  ;;  %v1377_v62 = vsel %vm1234_vm3, %v1083_v56, 0 }
 0x1f0   : > { %2482 = vmatpush3.bf16.xpose.msra.mxu1 %v1239_v47  ;;  %2488 = vmatpush3.bf16.xpose.msra.mxu0 %v1285_v48  ;;  %v926_v53 = vcombine.low %v902_v45, %v918_v46  ;;  %v927_v54 = vcombine.high %v902_v45, %v918_v46  ;;  %v928_v63 = vcombine.low %v909_v59, %v925_v60  ;;  %v730_v30 = vsub.s32 2, %v3266_v9 }
 0x1f1   : > { %2493 = vmatprep.subr.bf16.mxu1 %v2914_v2  ;;  %2499 = vmatprep.subr.bf16.mxu0 %v2914_v2  ;;  %v929_v0 = vcombine.high %v909_v59, %v925_v60 }
 0x1f2   : > { %v930_v57 = vpack.c.bf16 %v926_v53, %v926_v53  ;;  %v931_v58 = vpack.c.bf16 %v927_v54, %v927_v54  ;;  %v932_v1 = vpack.c.bf16 %v928_v63, %v928_v63  ;;  %v731_v36 = vrot.slane %v3270_v11, %v730_v30 }
 0x1f3   : > { %v933_v3 = vpack.c.bf16 %v929_v0, %v929_v0 }
 0x1f4   : > { %v779_v38 = vadd.f32 %v778_v4, %v731_v36 }
 0x1f7   : > { %2484 = vmatmul.mubr.msk.bf16.vlgmr.msra.gmra.mrb[4].mxu1 %vm1234_vm3, %v930_v57  ;;  %2490 = vmatmul.mubr.msk.bf16.vlgmr.msra.gmra.mrb[8].mxu0 %vm1234_vm3, %v931_v58 }
 0x1f8   : > { %2494 = vmatpush3.bf16.xpose.msra.mxu1 %v1331_v61  ;;  %2500 = vmatpush3.bf16.xpose.msra.mxu0 %v1377_v62 }
 0x1f9   : > { %2495 = vmatprep.mubr.msk.bf16.mxu1 %vm2915_vm1, %v2914_v2  ;;  %2501 = vmatprep.mubr.msk.bf16.mxu0 %vm2915_vm1, %v2914_v2 }
 0x1fa   : > { %2505 = vmatprep.subr.bf16.mxu1 %v2914_v2  ;;  %2511 = vmatprep.subr.bf16.mxu0 %v2914_v2 }
 0x1ff   : > { %2496 = vmatmul.mubr.msk.bf16.vlgmr.msra.gmra.mrb[8].mxu1 %vm1234_vm3, %v932_v1  ;;  %2502 = vmatmul.mubr.msk.bf16.vlgmr.msra.gmra.mrb[12].mxu0 %vm1234_vm3, %v933_v3 }
 0x200   : > { %2507 = vmatprep.mubr.msk.bf16.mxu1 %vm2915_vm1, %v2914_v2  ;;  %2513 = vmatprep.mubr.msk.bf16.mxu0 %vm2915_vm1, %v2914_v2 }
 0x2ca   : > { %v1275_v10 = vpop.f32.mrb[4].mxu1  ;;  %v1321_v12 = vpop.f32.mrb[8].mxu0 }
 0x2cb   : > { %v1419_v13 = vmul.f32 0.35355338, %v1275_v10  ;;  %v1420_v14 = vmul.f32 0.35355338, %v1321_v12  ;;  %v2485_v15 = vpop.f32.mrb[5].mxu1  ;;  %v2491_v16 = vpop.f32.mrb[9].mxu0 }
 0x2cc   : > { %v1278_v17 = vpop.f32.mrb[6].mxu1  ;;  %v1324_v18 = vpop.f32.mrb[10].mxu0 }
 0x2cd   : > { %v2486_v19 = vpop.f32.mrb[7].mxu1  ;;  %v2492_v20 = vpop.f32.mrb[11].mxu0  ;;  %v1423_v21 = vsel %vm1234_vm3, %v1419_v13, -inf  ;;  %v1426_v22 = vsel %vm1234_vm3, %v1420_v14, -inf }
 0x2ce   : > { %1424 = vmax.xlane.f32.xlu0 %v1423_v21  ;;  %1427 = vmax.xlane.f32.xlu1 %v1426_v22 }
 0x2d2   : > { %v1367_v23 = vpop.f32.mrb[8].mxu1  ;;  %v1413_v24 = vpop.f32.mrb[12].mxu0 }
 0x2d3   : > { %v1421_v25 = vmul.f32 0.35355338, %v1367_v23  ;;  %v2497_v26 = vpop.f32.mrb[9].mxu1  ;;  %v2503_v27 = vpop.f32.mrb[13].mxu0  ;;  %v1422_v31 = vmul.f32 0.35355338, %v1413_v24 }
 0x2d4   : > { %v1370_v28 = vpop.f32.mrb[10].mxu1  ;;  %v1416_v29 = vpop.f32.mrb[14].mxu0 }
 0x2d5   : > { %v2498_v32 = vpop.f32.mrb[11].mxu1  ;;  %v2504_v33 = vpop.f32.mrb[15].mxu0  ;;  %v1429_v34 = vsel %vm1234_vm3, %v1421_v25, -inf  ;;  %v1432_v37 = vsel %vm1234_vm3, %v1422_v31, -inf }
 0x2d6   : > { %1430 = vmax.xlane.f32.xlu0 %v1429_v34 }
 0x2da   : > { %1433 = vmax.xlane.f32.xlu0 %v1432_v37 }
 0x2df   : > { %1085 = vrot.lane.b32.xlu1 %v779_v38, %s2917_s5 }
 0x35b   : > { %v1425_v39 = vpop.xlane.xlu0 %1424  ;;  %v1428_v40 = vpop.xlane.xlu1 %1427 }
 0x35c   : > { %v1435_v41 = vsub.f32 %v1419_v13, %v1425_v39  ;;  %v1436_v43 = vsub.f32 %v1420_v14, %v1428_v40 }
 0x35e   : > { %v1439_v44 = vmul.f32 1.442695, %v1435_v41  ;;  %v1441_v45 = vmul.f32 1.442695, %v1436_v43 }
 0x35f   : > { %v1086_v60 = vpop.permute.xlu1 %1085 }
 0x360   : > { %2700 = vpow2.f32 %v1439_v44 }
 0x361   : > { %2702 = vpow2.f32 %v1441_v45 }
 0x363   : > { %v1431_v50 = vpop.xlane.xlu0 %1430 }
 0x364   : > { %v1437_v52 = vsub.f32 %v1421_v25, %v1431_v50 }
 0x366   : > { %v1443_v54 = vmul.f32 1.442695, %v1437_v52 }
 0x367   : > { %v1434_v51 = vpop.xlane.xlu0 %1433 }
 0x368   : > { %v1438_v53 = vsub.f32 %v1422_v31, %v1434_v51  ;;  %2704 = vpow2.f32 %v1443_v54 }
 0x36a   : > { %v3353_v46 = vpop.eup %2700  ;;  %v1445_v55 = vmul.f32 1.442695, %v1438_v53 }
 0x36b   : > { %v3355_v47 = vpop.eup %2702  ;;  %v1447_v48 = vsel %vm1234_vm3, %v3353_v46, 0.0 }
 0x36c   : > { %1448 = vadd.xlane.f32.xlu1 %v1447_v48  ;;  %v1450_v49 = vsel %vm1234_vm3, %v3355_v47, 0.0  ;;  %2706 = vpow2.f32 %v1445_v55 }
 0x36d   : > { %1451 = vadd.xlane.f32.xlu0 %v1450_v49 }
 0x372   : > { %v3363_v56 = vpop.eup %2704 }
 0x373   : > { %v1453_v58 = vsel %vm1234_vm3, %v3363_v56, 0.0 }
 0x376   : > { %v3365_v57 = vpop.eup %2706 }
 0x377   : > { %v1456_v59 = vsel %vm1234_vm3, %v3365_v57, 0.0 }
 0x37d   : > { %1091 = vrot.lane.b32.xlu1 %v779_v38, %s2916_s1 }
 0x383   : > { %1088 = vrot.lane.b32.xlu0 %v779_v38, %s2918_s22 }
 0x3a1   : > { %1454 = vadd.xlane.f32.xlu1 %v1453_v58 }
 0x3a2   : > { %1457 = vadd.xlane.f32.xlu0 %v1456_v59 }
 0x3f9   : > { %v1449_v61 = vpop.xlane.xlu1 %1448 }
 0x3fa   : > { %v1452_v62 = vpop.xlane.xlu0 %1451  ;;  %2708 = vrcp.f32 %v1449_v61 }
 0x3fb   : > { %2710 = vrcp.f32 %v1452_v62 }
 0x3fd   : > { %v1092_v63 = vpop.permute.xlu1 %1091 }
 0x3fe   : > { %v1110_v0 = vcombine.low %v1086_v60, %v1092_v63  ;;  %v1111_v1 = vcombine.high %v1086_v60, %v1092_v63  ;;  %v1089_v3 = vpop.permute.xlu0 %1088 }
 0x3ff   : > { %v1094_v4 = vcombine.low %v779_v38, %v1089_v3  ;;  %v1095_v6 = vcombine.high %v779_v38, %v1089_v3 }
 0x400   : > { %v1118_v7 = vrot.slane %v1110_v0, %v3289_v35  ;;  %v1125_v8 = vrot.slane %v1111_v1, %v3289_v35 }
 0x401   : > { %v1102_v10 = vrot.slane %v1094_v4, %v3289_v35  ;;  %v1109_v12 = vrot.slane %v1095_v6, %v3289_v35 }
 0x403   : > { %v1126_v13 = vcombine.low %v1102_v10, %v1118_v7  ;;  %v1127_v14 = vcombine.high %v1102_v10, %v1118_v7  ;;  %v1142_v15 = vcombine.low %v1109_v12, %v1125_v8  ;;  %v1143_v16 = vcombine.high %v1109_v12, %v1125_v8 }
 0x404   : > { %v2709_v36 = vpop.eup %2708 }
 0x405   : > { %v1134_v17 = vrot.slane %v1126_v13, %v3292_v42  ;;  %v1141_v18 = vrot.slane %v1127_v14, %v3292_v42  ;;  %v1150_v19 = vrot.slane %v1142_v15, %v3292_v42  ;;  %v1157_v20 = vrot.slane %v1143_v16, %v3292_v42  ;;  %v2711_v39 = vpop.eup %2710 }
 0x406   : > { %v1463_v45 = vmul.f32 %v2709_v36, %v3353_v46  ;;  %v1464_v48 = vmul.f32 %v2711_v39, %v3355_v47 }
 0x407   : > { %v1162_v21 = vcombine.low %v1134_v17, %v1141_v18  ;;  %v2379_v22 = vcombine.high %v1134_v17, %v1141_v18  ;;  %v1178_v23 = vcombine.low %v1150_v19, %v1157_v20  ;;  %v2380_v24 = vcombine.high %v1150_v19, %v1157_v20 }
 0x408   : > { %v1467_v55 = vpack.c.bf16 %v1463_v45, %v1463_v45  ;;  %v1468_v58 = vpack.c.bf16 %v1464_v48, %v1464_v48 }
 0x409   : > { %v1169_v25 = vrot.slane %v1162_v21, %v3289_v35  ;;  %v1177_v26 = vrot.slane %v2379_v22, %v3289_v35  ;;  %v1185_v27 = vrot.slane %v1178_v23, %v3289_v35  ;;  %v1193_v28 = vrot.slane %v2380_v24, %v3289_v35 }
 0x40b   : > { %v1194_v29 = vcombine.low %v1169_v25, %v1177_v26  ;;  %v1195_v30 = vcombine.high %v1169_v25, %v1177_v26  ;;  %v1210_v31 = vcombine.low %v1185_v27, %v1193_v28  ;;  %v1211_v32 = vcombine.high %v1185_v27, %v1193_v28 }
 0x40d   : > { %v1202_v33 = vrot.slane %v1194_v29, %v3292_v42  ;;  %v1209_v34 = vrot.slane %v1195_v30, %v3292_v42  ;;  %v1218_v37 = vrot.slane %v1210_v31, %v3292_v42  ;;  %v1225_v38 = vrot.slane %v1211_v32, %v3292_v42 }
 0x40f   : > { %v1226_v40 = vcombine.low %v1202_v33, %v1218_v37  ;;  %v1227_v41 = vcombine.high %v1202_v33, %v1218_v37  ;;  %v1228_v43 = vcombine.low %v1209_v34, %v1225_v38  ;;  %v1229_v44 = vcombine.high %v1209_v34, %v1225_v38  ;;  %v2692_v33 = vld [vmem:[%s3228_s26] sm:$0xff]  }
 0x411   : > { %v1230_v49 = vpack.c.bf16 %v1226_v40, %v1226_v40  ;;  %v1231_v50 = vpack.c.bf16 %v1227_v41, %v1227_v41  ;;  %v1232_v53 = vpack.c.bf16 %v1228_v43, %v1228_v43  ;;  %v1233_v54 = vpack.c.bf16 %v1229_v44, %v1229_v44  ;;  %v2693_v44 = vld [vmem:[%s3228_s26 + $0x8] sm:$0xff]   ;;  %s2922_s26 = smov 8  }
 0x413   : > { %v1476_v51 = vsel %vm1474_vm4, %v1230_v49, 0  ;;  %v1522_v52 = vsel %vm1474_vm4, %v1231_v50, 0  ;;  %v1568_v46 = vsel %vm1474_vm4, %v1232_v53, 0  ;;  %v1614_v47 = vsel %vm1474_vm4, %v1233_v54, 0 }
 0x414   : > { %2506 = vmatpush3.bf16.msra.mxu1 %v1476_v51  ;;  %2512 = vmatpush3.bf16.msra.mxu0 %v1522_v52 }
 0x415   : > { %2517 = vmatprep.subr.bf16.mxu1 %v2914_v2  ;;  %2523 = vmatprep.subr.bf16.mxu0 %v2914_v2 }
 0x417   : > { %2508 = vmatmul.mubr.msk.bf16.vlgmr.msra.gmra.mrb[12].mxu1 %vm1234_vm3, %v1467_v55  ;;  %2514 = vmatmul.mubr.msk.bf16.vlgmr.msra.gmra.mrb[16].mxu0 %vm1234_vm3, %v1468_v58 }
 0x418   : > { %2518 = vmatpush3.bf16.msra.mxu1 %v1568_v46  ;;  %2524 = vmatpush3.bf16.msra.mxu0 %v1614_v47 }
 0x419   : > { %2519 = vmatprep.mubr.msk.bf16.mxu1 %vm2915_vm1, %v2914_v2  ;;  %2525 = vmatprep.mubr.msk.bf16.mxu0 %vm2915_vm1, %v2914_v2 }
 0x41a   : > { %2529 = vmatprep.subr.bf16.mxu1 %v2914_v2  ;;  %2537 = vmatprep.subr.bf16.mxu0 %v2914_v2 }
 0x42e   : > { %v1455_v59 = vpop.xlane.xlu1 %1454 }
 0x42f   : > { %2712 = vrcp.f32 %v1455_v59  ;;  %v1458_v60 = vpop.xlane.xlu0 %1457 }
 0x430   : > { %2714 = vrcp.f32 %v1458_v60 }
 0x439   : > { %v2713_v61 = vpop.eup %2712 }
 0x43a   : > { %v2715_v62 = vpop.eup %2714  ;;  %v1465_v63 = vmul.f32 %v2713_v61, %v3363_v56 }
 0x43b   : > { %v1466_v0 = vmul.f32 %v2715_v62, %v3365_v57 }
 0x43c   : > { %v1469_v1 = vpack.c.bf16 %v1465_v63, %v1465_v63 }
 0x43d   : > { %v1470_v3 = vpack.c.bf16 %v1466_v0, %v1466_v0 }
 0x43e   : > { %2520 = vmatmul.mubr.msk.bf16.vlgmr.msra.gmra.mrb[16].mxu1 %vm1234_vm3, %v1469_v1 }
 0x43f   : > { %2526 = vmatmul.mubr.msk.bf16.vlgmr.msra.gmra.mrb[20].mxu0 %vm1234_vm3, %v1470_v3  ;;  %2533 = vmatprep.mubr.msk.bf16.mxu1 %vm2915_vm1, %v2914_v2 }
 0x440   : > { %2541 = vmatprep.mubr.msk.bf16.mxu0 %vm2915_vm1, %v2914_v2  ;;  %2530 = vmatpush3.bf16.msra.mxu1 %v2692_v33 }
 0x441   : > { %2531 = vmatprep.subr.bf16.mxu1 %v2914_v2 }
 0x444   : > { %2532 = vmatpush3.bf16.msra.mxu1 %v2693_v44 }
 0x445   : > { %2545 = vmatprep.subr.bf16.mxu1 %v2914_v2 }
 0x4ea   : > { %v1512_v4 = vpop.f32.mrb[12].mxu1  ;;  %v1558_v6 = vpop.f32.mrb[16].mxu0 }
 0x4eb   : > { %v2509_v7 = vpop.f32.mrb[13].mxu1  ;;  %v2515_v8 = vpop.f32.mrb[17].mxu0 }
 0x4ec   : > { %v1515_v10 = vpop.f32.mrb[14].mxu1  ;;  %v1561_v56 = vpop.f32.mrb[18].mxu0 }
 0x4ed   : > { %v2510_v12 = vpop.f32.mrb[15].mxu1  ;;  %v2516_v57 = vpop.f32.mrb[19].mxu0 }
 0x511   : > { %v1604_v13 = vpop.f32.mrb[16].mxu1 }
 0x512   : > { %v1656_v14 = vcombine.low %v1512_v4, %v1604_v13  ;;  %v1657_v15 = vcombine.high %v1512_v4, %v1604_v13  ;;  %v1650_v16 = vpop.f32.mrb[20].mxu0  ;;  %v2521_v17 = vpop.f32.mrb[17].mxu1 }
 0x513   : > { %v1672_v18 = vcombine.low %v1558_v6, %v1650_v16  ;;  %v1673_v19 = vcombine.high %v1558_v6, %v1650_v16  ;;  %v2527_v20 = vpop.f32.mrb[21].mxu0  ;;  %v1607_v21 = vpop.f32.mrb[18].mxu1  ;;  %v1816_v6 = vsub.s32 3, %v3266_v9 }
 0x514   : > { %v1664_v22 = vrot.slane %v1656_v14, %v3289_v35  ;;  %v1671_v23 = vrot.slane %v1657_v15, %v3289_v35  ;;  %v1653_v24 = vpop.f32.mrb[22].mxu0  ;;  %v2522_v25 = vpop.f32.mrb[19].mxu1  ;;  %v2694_v20 = vld [vmem:[%s3615_s30] sm:$0xff]  }
 0x515   : > { %v1680_v26 = vrot.slane %v1672_v18, %v3289_v35  ;;  %v1687_v27 = vrot.slane %v1673_v19, %v3289_v35  ;;  %v2528_v28 = vpop.f32.mrb[23].mxu0  ;;  %v1817_v7 = vrot.slane %v3270_v11, %v1816_v6  ;;  %2538 = vmatpush3.bf16.msra.mxu0 %v2694_v20  ;;  %v2695_v21 = vld [vmem:[%s3616_s14 + $0x8] sm:$0xff]  }
 0x516   : > { %2539 = vmatprep.subr.bf16.mxu0 %v2914_v2 }
 0x517   : > { %v1688_v29 = vcombine.low %v1664_v22, %v1680_v26  ;;  %v1689_v30 = vcombine.high %v1664_v22, %v1680_v26  ;;  %v1704_v31 = vcombine.low %v1671_v23, %v1687_v27  ;;  %v1705_v32 = vcombine.high %v1671_v23, %v1687_v27  ;;  %v2697_v22 = vld [vmem:[%s3233_s21 + $0x8] sm:$0xff]  }
 0x518   : > { %v1890_v26 = vsub.s32 4, %v3266_v9  ;;  %v1895_v27 = vsub.s32 5, %v3266_v9 }
 0x519   : > { %v1696_v34 = vrot.slane %v1688_v29, %v3292_v42  ;;  %v1703_v36 = vrot.slane %v1689_v30, %v3292_v42  ;;  %v1712_v37 = vrot.slane %v1704_v31, %v3292_v42  ;;  %v1719_v38 = vrot.slane %v1705_v32, %v3292_v42  ;;  %2540 = vmatpush3.bf16.msra.mxu0 %v2695_v21 }
 0x51a   : > { %v1891_v28 = vrot.slane %v3270_v11, %v1890_v26  ;;  %v1896_v31 = vrot.slane %v3270_v11, %v1895_v27 }
 0x51b   : > { %v1724_v39 = vcombine.low %v1696_v34, %v1703_v36  ;;  %v2389_v40 = vcombine.high %v1696_v34, %v1703_v36  ;;  %v1740_v41 = vcombine.low %v1712_v37, %v1719_v38  ;;  %v2390_v43 = vcombine.high %v1712_v37, %v1719_v38  ;;  %v2698_v36 = vld [vmem:[%s3233_s21 + $0x10] sm:$0xff]   ;;  %v2699_v37 = vld [vmem:[%s3233_s21 + $0x18] sm:$0xff]   ;;  %v2394_v38 = vld [vmem:[%s586_s27] ss:$0 sm:$0xff] }
 0x51d   : > { %v1731_v45 = vrot.slane %v1724_v39, %v3289_v35  ;;  %v1739_v48 = vrot.slane %v2389_v40, %v3289_v35  ;;  %v1747_v49 = vrot.slane %v1740_v41, %v3289_v35  ;;  %v1755_v50 = vrot.slane %v2390_v43, %v3289_v35 }
 0x51f   : > { %v1757_v51 = vcombine.high %v1731_v45, %v1739_v48  ;;  %v1773_v52 = vcombine.high %v1747_v49, %v1755_v50  ;;  %v1756_v53 = vcombine.low %v1731_v45, %v1739_v48  ;;  %v1772_v54 = vcombine.low %v1747_v49, %v1755_v50 }
 0x520   : > { %v1976_v49 = vsub.s32 6, %v3266_v9 }
 0x521   : > { %v1771_v55 = vrot.slane %v1757_v51, %v3292_v42  ;;  %v1787_v58 = vrot.slane %v1773_v52, %v3292_v42  ;;  %v1764_v46 = vrot.slane %v1756_v53, %v3292_v42  ;;  %v1780_v47 = vrot.slane %v1772_v54, %v3292_v42 }
 0x523   : > { %v1790_v59 = vcombine.low %v1771_v55, %v1787_v58  ;;  %v1789_v60 = vcombine.high %v1764_v46, %v1780_v47  ;;  %v1791_v61 = vcombine.high %v1771_v55, %v1787_v58  ;;  %v1788_v62 = vcombine.low %v1764_v46, %v1780_v47 }
 0x525   : > { %1797 = vrot.lane.b32.xlu1 %v1790_v59, %s2921_s25  ;;  %1793 = vrot.lane.b32.xlu0 %v1789_v60, %s2922_s26 }
 0x529   : > { %1801 = vrot.lane.b32.xlu1 %v1791_v61, %s2923_s12 }
 0x597   : > { %v1798_v35 = vpop.permute.xlu1 %1797  ;;  %v1794_v63 = vpop.permute.xlu0 %1793 }
 0x598   : > { %v1804_v0 = vsel %vm1234_vm3, %v1788_v62, %v1794_v63 }
 0x599   : > { %v1806_v3 = vsel %vm1805_vm5, %v1804_v0, %v1798_v35  ;;  %v2062_v0 = vsub.s32 7, %v3266_v9  ;;  %v2721_v9 = vld [vmem:[%s3618_s16 + $0x8] sm:$0xff] (!%p2404_p13)  }
 0x59b   : > { %v1802_v1 = vpop.permute.xlu1 %1801 }
 0x59c   : > { %v1808_v4 = vsel %vm1807_vm6, %v1806_v3, %v1802_v1  ;;  %v2063_v1 = vrot.slane %v3270_v11, %v2062_v0 }
 0x59d   : > { %v1809_v42 = vpack.c.bf16 %v1808_v4, %v1808_v4 }
 0x59f   : > { %2534 = vmatmul.mubr.msk.bf16.vlgmr.msra.gmra.mrb[20].mxu1 %vm620_vm2, %v1809_v42  ;;  %v2403_v42 = vld [vmem:[%s3238_s0 + $0x8] ss:$0 sm:$0xff]  ;;  %s3619_s0 = sld [smem:[#allocation30_spill]] (!%p2404_p13) }
 0x5a0   : > { %2553 = vmatprep.mubr.msk.bf16.mxu1 %vm2915_vm1, %v2914_v2 }
 0x672   : > { %v1867_v8 = vpop.f32.mrb[20].mxu1 }
 0x673   : > { %v1868_v10 = vadd.f32 %v1867_v8, %v1817_v7  ;;  %v2535_v56 = vpop.f32.mrb[21].mxu1  ;;  %v2720_v8 = vld [vmem:[%s3618_s16] sm:$0xff] (!%p2404_p13)  }
 0x674   : > { %v1870_v12 = vpop.f32.mrb[22].mxu1 }
 0x675   : > { %v2536_v57 = vpop.f32.mrb[23].mxu1  ;;  %v1873_v13 = vadd.f32 %v1868_v10, %v3251_v5  ;;  %v2696_v5 = vld [vmem:[%s3233_s21] sm:$0xff]   ;;  %v2924_v10 = vmov (!%p2404_p13), 0.0  }
 0x676   : > { %2546 = vmatpush3.bf16.msra.mxu1 %v2696_v5  ;;  %2557 = vmatprep.subr.bf16.mxu0 (!%p2404_p13), %v2924_v10 }
 0x677   : > { %v1874_v14 = vsel %vm620_vm2, %v1873_v13, 0.0  ;;  %2547 = vmatprep.subr.bf16.mxu1 %v2914_v2 }
 0x678   : > { %1875 = vadd.xlane.f32.xlu0 %v1874_v14 }
 0x67a   : > { %2548 = vmatpush3.bf16.msra.mxu1 %v2697_v22 }
 0x67b   : > { %2549 = vmatprep.subr.bf16.mxu1 %v2914_v2 }
 0x67e   : > { %2550 = vmatpush3.bf16.msra.mxu1 %v2698_v36 }
 0x67f   : > { %2551 = vmatprep.subr.bf16.mxu1 %v2914_v2  ;;  %v1977_v2 = vrot.slane %v3270_v11, %v1976_v49 }
 0x682   : > { %2552 = vmatpush3.bf16.msra.mxu1 %v2699_v37 }
 0x705   : > { %v1876_v15 = vpop.xlane.xlu0 %1875 }
 0x706   : > { %v1878_v16 = vmul.f32 0.03125, %v1876_v15 }
 0x708   : > { %v1879_v17 = vsub.f32 %v1873_v13, %v1878_v16 }
 0x70a   : > { %v1880_v18 = vmul.f32 %v1879_v17, %v1879_v17 }
 0x70c   : > { %v1881_v19 = vsel %vm620_vm2, %v1880_v18, 0.0  ;;  %v2089_v18 = vld [vmem:[%s3619_s0] sm:$0x1] (!%p2404_p13) }
 0x70d   : > { %1882 = vadd.xlane.f32.xlu1 %v1881_v19 }
 0x79a   : > { %v1883_v23 = vpop.xlane.xlu1 %1882 }
 0x79b   : > { %v1884_v24 = vmul.f32 0.03125, %v1883_v23 }
 0x79d   : > { %v1885_v25 = vadd.f32 1e-05, %v1884_v24 }
 0x79f   : > { %2716 = vrsqrt.f32 %v1885_v25 }
 0x7a9   : > { %v2717_v29 = vpop.eup %2716 }
 0x7aa   : > { %v1887_v30 = vmul.f32 %v2717_v29, %v1879_v17 }
 0x7ac   : > { %v1892_v32 = vmul.f32 %v1891_v28, %v1887_v30 }
 0x7ae   : > { %v1897_v33 = vadd.f32 %v1896_v31, %v1892_v32 }
 0x7b0   : > { %v1898_v34 = vpack.c.bf16 %v1897_v33, %v1897_v33 }
 0x7b2   : > { %2542 = vmatmul.mubr.msk.bf16.vlgmr.msra.gmra.mrb[24].mxu0 %vm620_vm2, %v1898_v34 }
 0x7b3   : > { %2558 = vmatpush3.bf16.msra.mxu0 (!%p2404_p13), %v2720_v8  ;;  %2561 = vmatprep.mubr.msk.bf16.mxu0 (!%p2404_p13), %vm2925_vm8, %v2924_v10 }
 0x7b4   : > { %2559 = vmatprep.subr.bf16.mxu0 (!%p2404_p13), %v2924_v10 }
 0x7b7   : > { %2560 = vmatpush3.bf16.msra.mxu0 (!%p2404_p13), %v2721_v9 }
 0x885   : > { %v1958_v39 = vpop.f32.mrb[24].mxu0 }
 0x886   : > { %v1959_v40 = vadd.f32 %v2394_v38, %v1958_v39  ;;  %v2543_v41 = vpop.f32.mrb[25].mxu0 }
 0x887   : > { %v1961_v43 = vpop.f32.mrb[26].mxu0 }
 0x888   : > { %v1964_v44 = vmax.f32 %v1959_v40, 0.0  ;;  %v2544_v45 = vpop.f32.mrb[27].mxu0 }
 0x88a   : > { %v1965_v48 = vpack.c.bf16 %v1964_v44, %v1964_v44 }
 0x88c   : > { %2554 = vmatmul.mubr.msk.bf16.vlgmr.msra.gmra.mrb[24].mxu1 %vm2002_vm7, %v1965_v48 }
 0x95f   : > { %v2040_v50 = vpop.f32.mrb[24].mxu1 }
 0x960   : > { %v2041_v51 = vadd.f32 %v2040_v50, %v1977_v2  ;;  %v2555_v52 = vpop.f32.mrb[25].mxu1 }
 0x961   : > { %v2043_v53 = vpop.f32.mrb[26].mxu1 }
 0x962   : > { %v2556_v54 = vpop.f32.mrb[27].mxu1  ;;  %v2046_v55 = vadd.f32 %v2041_v51, %v1897_v33 }
 0x964   : > { %v2047_v58 = vsel %vm620_vm2, %v2046_v55, 0.0 }
 0x965   : > { %2048 = vadd.xlane.f32.xlu0 %v2047_v58 }
 0x9f2   : > { %v2049_v46 = vpop.xlane.xlu0 %2048 }
 0x9f3   : > { %v2050_v47 = vmul.f32 0.03125, %v2049_v46 }
 0x9f5   : > { %v2051_v59 = vsub.f32 %v2046_v55, %v2050_v47 }
 0x9f7   : > { %v2052_v60 = vmul.f32 %v2051_v59, %v2051_v59 }
 0x9f9   : > { %v2053_v61 = vsel %vm620_vm2, %v2052_v60, 0.0 }
 0x9fa   : > { %2054 = vadd.xlane.f32.xlu0 %v2053_v61 }
 0xa87   : > { %v2055_v62 = vpop.xlane.xlu0 %2054 }
 0xa88   : > { %v2056_v35 = vmul.f32 0.03125, %v2055_v62 }
 0xa8a   : > { %v2057_v63 = vadd.f32 1e-05, %v2056_v35 }
 0xa8c   : > { %2718 = vrsqrt.f32 %v2057_v63 }
 0xa96   : > { %v2719_v3 = vpop.eup %2718 }
 0xa97   : > { %v2059_v4 = vmul.f32 %v2719_v3, %v2051_v59  ;;  %2074 = sbr.rel (%p2404_p13) target bundleno = 2949 (0xb85), region = 80 }
 0xa99   : > { %v2064_v6 = vmul.f32 %v2063_v1, %v2059_v4 }
 0xa9b   : > { %v2069_v7 = vadd.f32 %v2403_v42, %v2064_v6 }
 0xa9d   : > { %2070 = vst.msk [vmem:[#allocation2] sm:$0xff] %vm620_vm2, %v2069_v7  ;;  %v2075_v11 = vsel (!%p2404_p13), %vm620_vm2, %v2069_v7, 0.0 }
 0xa9e   : > { %v2076_v56 = vrot.slane %v2075_v11, 4 }
 0xaa0   : > { %v2077_v12 = vadd.f32 %v2076_v56, %v2075_v11 }
 0xaa2   : > { %v2078_v57 = vrot.slane %v2077_v12, 2 }
 0xaa4   : > { %v2079_v13 = vadd.f32 %v2078_v57, %v2077_v12 }
 0xaa6   : > { %v2080_v14 = vrot.slane %v2079_v13, 1 }
 0xaa8   : > { %v2081_v15 = vadd.f32 %v2080_v14, %v2079_v13 }
 0xaaa   : > { %v2083_v16 = vmul.f32 0.125, %v2081_v15 }
 0xaac   : > { %v2084_v17 = vpack.c.bf16 %v2083_v16, %v2083_v16 }
 0xaae   : > { %2562 = vmatmul.mubr.msk.bf16.vlgmr.msra.gmra.mrb[0].mxu0 %vm620_vm2, %v2084_v17 }
 0xb81   : > { %v2139_v19 = vpop.f32.mrb[0].mxu0 }
 0xb82   : > { %v2140_v20 = vadd.f32 %v2139_v19, %v2089_v18  ;;  %v2563_v21 = vpop.f32.mrb[1].mxu0 }
 0xb83   : > { %v2142_v5 = vpop.f32.mrb[2].mxu0 }
 0xb84   : > { %2146 = vst.msk [vmem:[%s553_s2] sm:$0x1] %vm2145_vm9, %v2140_v20  ;;  %v2564_v22 = vpop.f32.mrb[3].mxu0 }
 0xb85 PF: > { %s3620_s17 = sld [smem:[#allocation15_spill]]  ;;  %s3621_s20 = sld [smem:[#allocation19_spill]] }
 0xb86   : > { %s3622_s22 = sld [smem:[#allocation31_spill]]  ;;  %s2160_s26 = sshll.u32 %s553_s2, 4  ;;  %s2161_s26 = int_to_ptr.vmem [resolvable:$true] %s2160_s26 }
 0xb87   : > { %s2148_s30 = scalar_lea.sflag [#allocation5], %s3192_s24  ;;  %s2782_s14 = scalar_lea.vmem %s2161_s26, 16 }
 0xb88   : > { %p2783_p10 = scmp.ne.s32.totalorder %s2161_s26, %s2782_s14  ;;  %s2926_s10 = smov [#allocation8]  }
 0xb89   : > { %s2786_s15 = sshll.u32 %s2926_s10, 4  ;;  %s2787_s15 = int_to_ptr.vmem [resolvable:$false] %s2786_s15 }
 0xb8a   : > { %s2788_s28 = scalar_lea.vmem %s2787_s15, 32  ;;  %p2789_p1 = scmp.lt.s32.totalorder %s2161_s26, %s2787_s15 }
 0xb8b   : > { %s2408_s27 = sshll.u32 %s3620_s17, 4  ;;  %p3624_p0 = scmp.ne.s32.totalorder %s3621_s20, 0 }
 0xb8c   : > { %s3623_s12 = smov %s3622_s22  ;;  %s3488_s25 = scalar_lea.hbm %s3622_s22, %s2408_s27 }
 0xb8d   : > { %p2784_p7 = pnand %p2783_p10, %p3624_p0  ;;  %p2790_p4 = scmp.lt.s32.totalorder %s2788_s28, %s2782_s14 }
 0xb8f   : > { %p2785_p9 = pneg %p2784_p7  ;;  %p2791_p11 = por %p2790_p4, %p2789_p1 }
 0xb91   : > { %p2792_p3 = pnand %p2791_p11, %p2785_p9 }
 0xb93   : > { %2795 = shalt.err (!%p2792_p3)
}
 0xb94   : > { %s2796_s2 = scalar_lea.hbm %s3488_s25, 16  ;;  %s2800_s11 = scalar_lea.hbm %s3623_s12, 32 }
 0xb95   : > { %p2797_p12 = scmp.ne.s32.totalorder %s3488_s25, %s2796_s2  ;;  %p2801_p6 = scmp.lt.u32.totalorder %s3488_s25, %s3623_s12 }
 0xb96   : > { %p2802_p8 = scmp.lt.u32.totalorder %s2800_s11, %s2796_s2  ;;  %p2804_p10 = scmp.lt.u32.totalorder %s2796_s2, %s3488_s25 }
 0xb97   : > { %p2798_p5 = pnand %p2797_p12, %p3624_p0 }
 0xb98   : > { %p2803_p13 = por %p2802_p8, %p2801_p6 }
 0xb99   : > { %p2799_p2 = pneg %p2798_p5 }
 0xb9a   : > { %p2805_p7 = por %p2804_p10, %p2803_p13 }
 0xb9c   : > { %p2806_p9 = pnand %p2805_p7, %p2799_p2 }
 0xb9e   : > { %2809 = shalt.err (!%p2806_p9)
}
 0xb9f   : > { %2569 = dma.vmem_to_hbm [thread:$0]  (%p3624_p0), %s2161_s26, 16, %s3488_s25, %s2148_s30  }
 0xba0 PF: > { %s3625_s23 = sld [smem:[#allocation18_spill]]  ;;  %s3626_s13 = sld [smem:[#allocation12_spill]] }
 0xba1   : > { %s3627_s0 = sld [smem:[#allocation20_spill]] }
 0xba6   : > { %p2583_p1 = scmp.ge.s32.totalorder %s3625_s23, 2  ;;  %s2172_s17 = sand.u32 1, %s3626_s13  }
 0xba7   : > { %p3628_p4 = scmp.ne.s32.totalorder %s3627_s0, 0  ;;  %s2173_s27 = scalar_lea.sflag [#allocation5], %s2172_s17 }
 0xba9   : > { %p2579_p11 = pnand %p2583_p1, %p3628_p4 }
 0xbab   : > { %2863 = dma.done.wait (!%p2579_p11), %s2173_s27, 16  }
 0xbac   : > { %2865 = vsyncadd (!%p2579_p11), %s2173_s27, 4294967280  ;;  %s30_s27 = sadd.s32 1, %s3625_s23   ;;  %s3629_s20 = sld [smem:[#allocation13_spill]] }
 0xbad   : > { %p27_p3 = scmp.ge.s32.totalorder %s30_s27, 6   ;;  %s3630_s21 = sld [smem:[#allocation14_spill]] }
 0xbae   : > { %s3631_s22 = sld [smem:[#allocation23_spill]]  ;;  %s3632_s23 = sld [smem:[#allocation16_spill]] }
 0xbaf   : > { %s3633_s24 = sld [smem:[#allocation17_spill]]  ;;  %s3634_s25 = sld [smem:[#allocation21_spill]] }
 0xbb0   : > { %s3635_s26 = sld [smem:[#allocation22_spill]]  ;;  %s3636_s17 = smov %s2872_s18 }
 0xbb1   : > { %s3637_s18 = smov %s2876_s19  ;;  %s3638_s19 = smov %s3150_s8 }
 0xbb2   :  { %29 = sbr.rel (!%p27_p3) target bundleno = 20 (0x14), region = 151 }
 0xbb9   :  { %2177 = vsyncpa [#allocation4], 1 }
 0xbba   :  { %2179 = vsyncpa [#allocation4 + $0x1], 1 }
 0xbbb   :  { %2180 = vsyncpa [#allocation7], 1 }
 0xbbc   :  { %2182 = vsyncpa [#allocation7 + $0x1], 1 }
 0xbbd   :  { %2183 = vsyncpa [#allocation5], 1 }
 0xbbe   :  { %2185 = vsyncpa [#allocation5 + $0x1], 1 }

</bundles_post_ra>
